<compile_context>
chip_gen: v7x
topology: tpu7x:2x2x1
jax: 0.10.0
libtpu: 0.0.40
codegen_flags: <defaults>
</compile_context>

<pallas_src>
import functools
import math

import jax
import jax.numpy as jnp
from jax.experimental import pallas as pl
from jax.experimental.pallas import tpu as pltpu

F32 = jnp.float32

_WEIGHT_ORDER = ("wtp", "btp", "wv", "bv", "wo", "bo",
                 "wr", "br", "w3", "b3", "w4", "b4")


# ----------------------------------------------------------------------------
# Fused Pallas kernel: attn5 + reduce5 + up3 + ReLU + up4 (one grid step/batch)
# ----------------------------------------------------------------------------
def _fused_tail_kernel(text_ref, wtp_ref, btp_ref, wv_ref, bv_ref,
                       wo_ref, bo_ref, wr_ref, br_ref,
                       w3_ref, b3_ref, w4_ref, b4_ref,
                       out_ref, xp_ref, pat_ref, *, H, W, C, C_out):
    """Everything that reaches the UNet output, for one batch element.

    text_ref : (1, 1, E)        text embedding for this batch element
    w*_ref   : prepared f32 weight / bias tiles (see prepare_params)
    out_ref  : (1, H*W, C_out)  output rows (permuted to NCHW outside)
    xp_ref   : (1, H+2, W+2, C) zero-bordered activation scratch (both convs)
    pat_ref  : (H*W, 9*C)       im2col patch scratch (both convs)
    """
    HW = H * W

    # --- CrossAttention(attn5) + reduce_channels5.  Softmax over identical
    #     keys is uniform, so the attention output equals
    #     out_proj(v_proj(text_proj(text))) at every spatial position.
    t = text_ref[0]                                                      # (1, E)
    t = jnp.dot(t, wtp_ref[...], preferred_element_type=F32) + btp_ref[...]
    t = jnp.dot(t, wv_ref[...], preferred_element_type=F32) + bv_ref[...]
    t = jnp.dot(t, wo_ref[...], preferred_element_type=F32) + bo_ref[...]
    r = jnp.dot(t, wr_ref[...], preferred_element_type=F32) + br_ref[...]  # (1, C)

    # Zero the padded-activation scratch; only the interior is rewritten below,
    # so the 1-pixel zero border implements padding=1 for both convs.
    xp_ref[...] = jnp.zeros_like(xp_ref)

    def conv3x3(interior, w_ref, b_ref):
        """3x3 / stride-1 / pad-1 conv as ONE im2col matmul (vreg result, no
        accumulator RMW)."""
        xp_ref[0, 1:H + 1, 1:W + 1, :] = interior                        # (H, W, C)
        for ky in range(3):
            for kx in range(3):
                tap = ky * 3 + kx
                pat_ref[:, tap * C:(tap + 1) * C] = (
                    xp_ref[0, ky:ky + H, kx:kx + W, :].reshape(HW, C))
        return jnp.dot(pat_ref[...], w_ref[...],
                       preferred_element_type=F32) + b_ref[...]

    # --- up3: ConvTranspose2d(128->64) == conv3x3 with flipped kernel.
    #     Output channels are zero-padded to C=128 (in prepare_params) so the
    #     next conv's im2col stays lane-aligned; ReLU keeps the padding at 0.
    x3 = jnp.broadcast_to(r.reshape(1, 1, C), (H, W, C))
    y3 = jnp.maximum(conv3x3(x3, w3_ref, b3_ref), 0.0)                   # (HW, C)

    # --- up4: ConvTranspose2d(64->latent_dim), no activation.
    y4 = conv3x3(y3.reshape(H, W, C), w4_ref, b4_ref)                    # (HW, C_out)

    out_ref[...] = y4.reshape(1, HW, C_out)


# ----------------------------------------------------------------------------
# Forward pass (matches UNet.forward(x, text_embedding) -> (N, latent, H, W))
# ----------------------------------------------------------------------------
@jax.jit
def unet_forward(x_nchw, text_embedding, kp):
    """x is accepted for interface fidelity but (by the module's dataflow) the
    returned tensor does not depend on it — see header comment."""
    N, _, H, W = x_nchw.shape
    E = text_embedding.shape[-1]
    C = kp["wr"].shape[1]            # 128 (reduce_channels5 output channels)
    C_out = kp["w4"].shape[1]        # latent_dim
    HW = H * W

    text3 = text_embedding.astype(F32).reshape(N, 1, E)
    weights = [kp[k] for k in _WEIGHT_ORDER]

    kernel = functools.partial(_fused_tail_kernel, H=H, W=W, C=C, C_out=C_out)
    out = pl.pallas_call(
        kernel,
        out_shape=jax.ShapeDtypeStruct((N, HW, C_out), F32),
        grid=(N,),
        in_specs=[pl.BlockSpec((1, 1, E), lambda n: (n, 0, 0))]
                 + [pl.BlockSpec(w.shape, lambda n: (0, 0)) for w in weights],
        out_specs=pl.BlockSpec((1, HW, C_out), lambda n: (n, 0, 0)),
        scratch_shapes=[pltpu.VMEM((1, H + 2, W + 2, C), F32),
                        pltpu.VMEM((HW, 9 * C), F32)],
        compiler_params=pltpu.CompilerParams(
            dimension_semantics=("parallel",)),
    )(text3, *weights)

    # (N, H*W, C_out) -> NCHW; a few-KB permute left to XLA.
    return jnp.transpose(out, (0, 2, 1)).reshape(N, C_out, H, W)


# ----------------------------------------------------------------------------
# Parameters (deterministic synthetic init) + offline prep (hoisted out of jit)
# ----------------------------------------------------------------------------
def init_params(key, latent_dim, text_embed_dim):
    """Full UNet parameter set (dead layers kept for fidelity with the module)."""
    E = text_embed_dim
    keys = iter(jax.random.split(key, 128))

    def conv_w(cin, cout):       # Conv2d 3x3, HWIO
        return jax.random.normal(next(keys), (3, 3, cin, cout), F32) / math.sqrt(9 * cin)

    def convt_w(cin, cout):      # ConvTranspose2d layout (Cin, Cout, kh, kw)
        return jax.random.normal(next(keys), (cin, cout, 3, 3), F32) / math.sqrt(9 * cin)

    def lin_w(din, dout):
        return jax.random.normal(next(keys), (din, dout), F32) / math.sqrt(din)

    def bias(c):
        return jax.random.normal(next(keys), (c,), F32) * 0.01

    def ca(input_dim):
        # latent_proj / Wq / Wk kept for parameter fidelity; they cannot affect
        # the output (keys == values == one repeated text vector).
        return dict(lp_w=lin_w(input_dim, E), lp_b=bias(E),
                    tp_w=lin_w(E, E), tp_b=bias(E),
                    wq=lin_w(E, E), bq=bias(E),
                    wk=lin_w(E, E), bk=bias(E),
                    wv=lin_w(E, E), bv=bias(E),
                    wo=lin_w(E, E), bo=bias(E))

    return {
        "down1": (conv_w(latent_dim, 64), bias(64)),
        "down2": (conv_w(64, 128), bias(128)),
        "attn1": ca(128), "reduce1": (lin_w(E, 128), bias(128)),
        "down3": (conv_w(128, 256), bias(256)),
        "attn2": ca(256), "reduce2": (lin_w(E, 256), bias(256)),
        "down4": (conv_w(256, 512), bias(512)),
        "attn3": ca(512), "reduce3": (lin_w(E, 512), bias(512)),
        "up1": (convt_w(512, 256), bias(256)),
        "attn4": ca(256), "reduce4": (lin_w(E, 256), bias(256)),
        "up2": (convt_w(256, 128), bias(128)),
        "attn5": ca(128), "reduce5": (lin_w(E, 128), bias(128)),
        "up3": (convt_w(128, 64), bias(64)),
        "up4": (convt_w(64, latent_dim), bias(latent_dim)),
    }


def prepare_params(raw):
    """One-time (outside jit) weight prep for the fused kernel:
    ConvTranspose flip/transpose -> conv weights, channel padding to C=128 for
    lane-aligned im2col, (9*C, Cout) flattening, bias reshapes."""
    a5 = raw["attn5"]
    rw, rb = raw["reduce5"]
    C = rw.shape[1]                                   # 128

    def conv_equiv(w_ct):                             # (Cin,Cout,3,3) -> (3,3,Cin,Cout)
        return jnp.transpose(jnp.flip(w_ct, axis=(2, 3)), (2, 3, 0, 1))

    w3 = conv_equiv(raw["up3"][0])                    # (3, 3, 128, 64)
    w4 = conv_equiv(raw["up4"][0])                    # (3, 3, 64, latent_dim)
    c3 = w3.shape[-1]                                 # 64
    lat = w4.shape[-1]

    w3p = jnp.pad(w3, ((0, 0), (0, 0), (0, 0), (0, C - c3))).reshape(9 * C, C)
    b3p = jnp.pad(raw["up3"][1], ((0, C - c3),)).reshape(1, C)
    w4p = jnp.pad(w4, ((0, 0), (0, 0), (0, C - c3), (0, 0))).reshape(9 * C, lat)
    b4p = raw["up4"][1].reshape(1, lat)

    return {
        "wtp": a5["tp_w"], "btp": a5["tp_b"].reshape(1, -1),
        "wv": a5["wv"], "bv": a5["bv"].reshape(1, -1),
        "wo": a5["wo"], "bo": a5["bo"].reshape(1, -1),
        "wr": rw, "br": rb.reshape(1, -1),
        "w3": w3p, "b3": b3p, "w4": w4p, "b4": b4p,
    }


# ----------------------------------------------------------------------------
# Plain-JAX reference of the live dataflow (validates the Pallas lowering via
# an independent conv path: lax.conv_general_dilated instead of im2col).
# ----------------------------------------------------------------------------
def reference_forward(x_nchw, text, raw):
    N, _, H, W = x_nchw.shape
    a5 = raw["attn5"]
    t = text @ a5["tp_w"] + a5["tp_b"]
    t = t @ a5["wv"] + a5["bv"]
    t = t @ a5["wo"] + a5["bo"]
    rw, rb = raw["reduce5"]
    r = t @ rw + rb                                                   # (N, 128)
    x = jnp.broadcast_to(r[:, None, None, :], (N, H, W, r.shape[-1]))

    def conv_t(x, w_ct, b):
        w = jnp.transpose(jnp.flip(w_ct, axis=(2, 3)), (2, 3, 0, 1))  # (3,3,Cin,Cout)
        y = jax.lax.conv_general_dilated(
            x, w, window_strides=(1, 1), padding="SAME",
            dimension_numbers=("NHWC", "HWIO", "NHWC"))
        return y + b

    y3 = jax.nn.relu(conv_t(x, *raw["up3"]))
    y4 = conv_t(y3, *raw["up4"])
    return jnp.transpose(y4, (0, 3, 1, 2))


# ----------------------------------------------------------------------------
if __name__ == "__main__":
    latent_dim, text_embed_dim = 4, 128    # embed_dim divisible by 8 heads
    N, H, W = 2, 8, 8

    key = jax.random.PRNGKey(0)
    kx, kt, kp = jax.random.split(key, 3)
    x = jax.random.normal(kx, (N, latent_dim, H, W), F32)             # NCHW as in PyTorch
    text_embedding = jax.random.normal(kt, (N, text_embed_dim), F32)

    raw_params = init_params(kp, latent_dim, text_embed_dim)
    kernel_params = prepare_params(raw_params)

    out = unet_forward(x, text_embedding, kernel_params)
    out = jax.block_until_ready(out)

    assert out.shape == (N, latent_dim, H, W), out.shape
    assert bool(jnp.all(jnp.isfinite(out)))

    ref = reference_forward(x, text_embedding, raw_params)
    max_err = float(jnp.max(jnp.abs(out - ref)))
    assert max_err < 5e-2, f"Pallas output mismatch vs JAX reference: {max_err}"

    print("KERNEL_OK")
</pallas_src>

<mosaic_0001>
module attributes {stable_mosaic.version = 11 : i64} {
  func.func @_fused_tail_kernel(%arg0: i32, %arg1: memref<1x1x128xf32, #tpu.memory_space<vmem>>, %arg2: memref<128x128xf32, #tpu.memory_space<vmem>>, %arg3: memref<1x128xf32, #tpu.memory_space<vmem>>, %arg4: memref<128x128xf32, #tpu.memory_space<vmem>>, %arg5: memref<1x128xf32, #tpu.memory_space<vmem>>, %arg6: memref<128x128xf32, #tpu.memory_space<vmem>>, %arg7: memref<1x128xf32, #tpu.memory_space<vmem>>, %arg8: memref<128x128xf32, #tpu.memory_space<vmem>>, %arg9: memref<1x128xf32, #tpu.memory_space<vmem>>, %arg10: memref<1152x128xf32, #tpu.memory_space<vmem>>, %arg11: memref<1x128xf32, #tpu.memory_space<vmem>>, %arg12: memref<1152x4xf32, #tpu.memory_space<vmem>>, %arg13: memref<1x4xf32, #tpu.memory_space<vmem>>, %arg14: memref<1x64x4xf32, #tpu.memory_space<vmem>>, %arg15: memref<1x10x10x128xf32, #tpu.memory_space<vmem>>, %arg16: memref<64x1152xf32, #tpu.memory_space<vmem>>) attributes {dimension_semantics = [#tpu.dimension_semantics<parallel>], iteration_bounds = array<i64: 2>, scalar_prefetch = 0 : i64, scratch_operands = 2 : i64, tpu.core_type = #tpu.core_type<tc>, window_params = [{transform_indices = @transform_0, window_bounds = array<i64: 1, 1, 128>}, {pipeline_mode = #tpu.pipeline_mode<synchronous>, transform_indices = @transform_1, window_bounds = array<i64: 128, 128>}, {pipeline_mode = #tpu.pipeline_mode<synchronous>, transform_indices = @transform_2, window_bounds = array<i64: 1, 128>}, {pipeline_mode = #tpu.pipeline_mode<synchronous>, transform_indices = @transform_3, window_bounds = array<i64: 128, 128>}, {pipeline_mode = #tpu.pipeline_mode<synchronous>, transform_indices = @transform_4, window_bounds = array<i64: 1, 128>}, {pipeline_mode = #tpu.pipeline_mode<synchronous>, transform_indices = @transform_5, window_bounds = array<i64: 128, 128>}, {pipeline_mode = #tpu.pipeline_mode<synchronous>, transform_indices = @transform_6, window_bounds = array<i64: 1, 128>}, {pipeline_mode = #tpu.pipeline_mode<synchronous>, transform_indices = @transform_7, window_bounds = array<i64: 128, 128>}, {pipeline_mode = #tpu.pipeline_mode<synchronous>, transform_indices = @transform_8, window_bounds = array<i64: 1, 128>}, {pipeline_mode = #tpu.pipeline_mode<synchronous>, transform_indices = @transform_9, window_bounds = array<i64: 1152, 128>}, {pipeline_mode = #tpu.pipeline_mode<synchronous>, transform_indices = @transform_10, window_bounds = array<i64: 1, 128>}, {pipeline_mode = #tpu.pipeline_mode<synchronous>, transform_indices = @transform_11, window_bounds = array<i64: 1152, 4>}, {pipeline_mode = #tpu.pipeline_mode<synchronous>, transform_indices = @transform_12, window_bounds = array<i64: 1, 4>}, {transform_indices = @transform_13, window_bounds = array<i64: 1, 64, 4>}]} {
    %c0 = arith.constant 0 : index
    %c0_0 = arith.constant 0 : index
    %c0_1 = arith.constant 0 : index
    %0 = vector.load %arg1[%c0, %c0_0, %c0_1] : memref<1x1x128xf32, #tpu.memory_space<vmem>>, vector<1x1x128xf32>
    %1 = vector.shape_cast %0 : vector<1x1x128xf32> to vector<1x128xf32>
    %c0_2 = arith.constant 0 : index
    %c0_3 = arith.constant 0 : index
    %2 = vector.load %arg2[%c0_2, %c0_3] : memref<128x128xf32, #tpu.memory_space<vmem>>, vector<128x128xf32>
    %cst = arith.constant dense<0.000000e+00> : vector<1x128xf32>
    %3 = tpu.matmul %1, %2, %cst {dimension_numbers = #tpu.dot_dimension_numbers<[1], [0], [0], [1], [0, 0, 1, 1], [], []>} : vector<1x128xf32>, vector<128x128xf32>, vector<1x128xf32> -> vector<1x128xf32>
    %c0_4 = arith.constant 0 : index
    %c0_5 = arith.constant 0 : index
    %4 = vector.load %arg3[%c0_4, %c0_5] : memref<1x128xf32, #tpu.memory_space<vmem>>, vector<1x128xf32>
    %5 = arith.addf %3, %4 : vector<1x128xf32>
    %c0_6 = arith.constant 0 : index
    %c0_7 = arith.constant 0 : index
    %6 = vector.load %arg4[%c0_6, %c0_7] : memref<128x128xf32, #tpu.memory_space<vmem>>, vector<128x128xf32>
    %cst_8 = arith.constant dense<0.000000e+00> : vector<1x128xf32>
    %7 = tpu.matmul %5, %6, %cst_8 {dimension_numbers = #tpu.dot_dimension_numbers<[1], [0], [0], [1], [0, 0, 1, 1], [], []>} : vector<1x128xf32>, vector<128x128xf32>, vector<1x128xf32> -> vector<1x128xf32>
    %c0_9 = arith.constant 0 : index
    %c0_10 = arith.constant 0 : index
    %8 = vector.load %arg5[%c0_9, %c0_10] : memref<1x128xf32, #tpu.memory_space<vmem>>, vector<1x128xf32>
    %9 = arith.addf %7, %8 : vector<1x128xf32>
    %c0_11 = arith.constant 0 : index
    %c0_12 = arith.constant 0 : index
    %10 = vector.load %arg6[%c0_11, %c0_12] : memref<128x128xf32, #tpu.memory_space<vmem>>, vector<128x128xf32>
    %cst_13 = arith.constant dense<0.000000e+00> : vector<1x128xf32>
    %11 = tpu.matmul %9, %10, %cst_13 {dimension_numbers = #tpu.dot_dimension_numbers<[1], [0], [0], [1], [0, 0, 1, 1], [], []>} : vector<1x128xf32>, vector<128x128xf32>, vector<1x128xf32> -> vector<1x128xf32>
    %c0_14 = arith.constant 0 : index
    %c0_15 = arith.constant 0 : index
    %12 = vector.load %arg7[%c0_14, %c0_15] : memref<1x128xf32, #tpu.memory_space<vmem>>, vector<1x128xf32>
    %13 = arith.addf %11, %12 : vector<1x128xf32>
    %c0_16 = arith.constant 0 : index
    %c0_17 = arith.constant 0 : index
    %14 = vector.load %arg8[%c0_16, %c0_17] : memref<128x128xf32, #tpu.memory_space<vmem>>, vector<128x128xf32>
    %cst_18 = arith.constant dense<0.000000e+00> : vector<1x128xf32>
    %15 = tpu.matmul %13, %14, %cst_18 {dimension_numbers = #tpu.dot_dimension_numbers<[1], [0], [0], [1], [0, 0, 1, 1], [], []>} : vector<1x128xf32>, vector<128x128xf32>, vector<1x128xf32> -> vector<1x128xf32>
    %c0_19 = arith.constant 0 : index
    %c0_20 = arith.constant 0 : index
    %16 = vector.load %arg9[%c0_19, %c0_20] : memref<1x128xf32, #tpu.memory_space<vmem>>, vector<1x128xf32>
    %17 = arith.addf %15, %16 : vector<1x128xf32>
    %cst_21 = arith.constant 0.000000e+00 : f32
    %18 = vector.broadcast %cst_21 : f32 to vector<1x10x10x128xf32>
    %c0_22 = arith.constant 0 : index
    %c0_23 = arith.constant 0 : index
    %c0_24 = arith.constant 0 : index
    %c0_25 = arith.constant 0 : index
    %19 = vector.load %arg15[%c0_22, %c0_23, %c0_24, %c0_25] : memref<1x10x10x128xf32, #tpu.memory_space<vmem>>, vector<1x10x10x128xf32>
    tpu.vector_store %arg15[%c0_22, %c0_23, %c0_24, %c0_25], %18 {strides = array<i32>} : memref<1x10x10x128xf32, #tpu.memory_space<vmem>>, vector<1x10x10x128xf32>,
    %20 = vector.shape_cast %17 : vector<1x128xf32> to vector<1x1x128xf32>
    %21 = vector.shape_cast %20 : vector<1x1x128xf32> to vector<1x1x128xf32>
    %22 = vector.broadcast %21 : vector<1x1x128xf32> to vector<8x8x128xf32>
    %c0_26 = arith.constant 0 : index
    %c1 = arith.constant 1 : index
    %c1_27 = arith.constant 1 : index
    %c0_28 = arith.constant 0 : index
    %23 = vector.load %arg15[%c0_26, %c1, %c1_27, %c0_28] : memref<1x10x10x128xf32, #tpu.memory_space<vmem>>, vector<1x8x8x128xf32>
    %24 = vector.shape_cast %23 : vector<1x8x8x128xf32> to vector<8x8x128xf32>
    %25 = vector.shape_cast %22 : vector<8x8x128xf32> to vector<1x8x8x128xf32>
    tpu.vector_store %arg15[%c0_26, %c1, %c1_27, %c0_28], %25 {strides = array<i32>} : memref<1x10x10x128xf32, #tpu.memory_space<vmem>>, vector<1x8x8x128xf32>,
    %c0_29 = arith.constant 0 : index
    %c0_30 = arith.constant 0 : index
    %c0_31 = arith.constant 0 : index
    %c0_32 = arith.constant 0 : index
    %26 = vector.load %arg15[%c0_29, %c0_30, %c0_31, %c0_32] : memref<1x10x10x128xf32, #tpu.memory_space<vmem>>, vector<1x8x8x128xf32>
    %27 = vector.shape_cast %26 : vector<1x8x8x128xf32> to vector<8x8x128xf32>
    %28 = vector.shape_cast %27 : vector<8x8x128xf32> to vector<64x128xf32>
    %c0_33 = arith.constant 0 : index
    %c0_34 = arith.constant 0 : index
    %29 = vector.load %arg16[%c0_33, %c0_34] : memref<64x1152xf32, #tpu.memory_space<vmem>>, vector<64x128xf32>
    tpu.vector_store %arg16[%c0_33, %c0_34], %28 {strides = array<i32>} : memref<64x1152xf32, #tpu.memory_space<vmem>>, vector<64x128xf32>,
    %c0_35 = arith.constant 0 : index
    %c0_36 = arith.constant 0 : index
    %c1_37 = arith.constant 1 : index
    %c0_38 = arith.constant 0 : index
    %30 = vector.load %arg15[%c0_35, %c0_36, %c1_37, %c0_38] : memref<1x10x10x128xf32, #tpu.memory_space<vmem>>, vector<1x8x8x128xf32>
    %31 = vector.shape_cast %30 : vector<1x8x8x128xf32> to vector<8x8x128xf32>
    %32 = vector.shape_cast %31 : vector<8x8x128xf32> to vector<64x128xf32>
    %c0_39 = arith.constant 0 : index
    %c128 = arith.constant 128 : index
    %33 = vector.load %arg16[%c0_39, %c128] : memref<64x1152xf32, #tpu.memory_space<vmem>>, vector<64x128xf32>
    tpu.vector_store %arg16[%c0_39, %c128], %32 {strides = array<i32>} : memref<64x1152xf32, #tpu.memory_space<vmem>>, vector<64x128xf32>,
    %c0_40 = arith.constant 0 : index
    %c0_41 = arith.constant 0 : index
    %c2 = arith.constant 2 : index
    %c0_42 = arith.constant 0 : index
    %34 = vector.load %arg15[%c0_40, %c0_41, %c2, %c0_42] : memref<1x10x10x128xf32, #tpu.memory_space<vmem>>, vector<1x8x8x128xf32>
    %35 = vector.shape_cast %34 : vector<1x8x8x128xf32> to vector<8x8x128xf32>
    %36 = vector.shape_cast %35 : vector<8x8x128xf32> to vector<64x128xf32>
    %c0_43 = arith.constant 0 : index
    %c256 = arith.constant 256 : index
    %37 = vector.load %arg16[%c0_43, %c256] : memref<64x1152xf32, #tpu.memory_space<vmem>>, vector<64x128xf32>
    tpu.vector_store %arg16[%c0_43, %c256], %36 {strides = array<i32>} : memref<64x1152xf32, #tpu.memory_space<vmem>>, vector<64x128xf32>,
    %c0_44 = arith.constant 0 : index
    %c1_45 = arith.constant 1 : index
    %c0_46 = arith.constant 0 : index
    %c0_47 = arith.constant 0 : index
    %38 = vector.load %arg15[%c0_44, %c1_45, %c0_46, %c0_47] : memref<1x10x10x128xf32, #tpu.memory_space<vmem>>, vector<1x8x8x128xf32>
    %39 = vector.shape_cast %38 : vector<1x8x8x128xf32> to vector<8x8x128xf32>
    %40 = vector.shape_cast %39 : vector<8x8x128xf32> to vector<64x128xf32>
    %c0_48 = arith.constant 0 : index
    %c384 = arith.constant 384 : index
    %41 = vector.load %arg16[%c0_48, %c384] : memref<64x1152xf32, #tpu.memory_space<vmem>>, vector<64x128xf32>
    tpu.vector_store %arg16[%c0_48, %c384], %40 {strides = array<i32>} : memref<64x1152xf32, #tpu.memory_space<vmem>>, vector<64x128xf32>,
    %c0_49 = arith.constant 0 : index
    %c1_50 = arith.constant 1 : index
    %c1_51 = arith.constant 1 : index
    %c0_52 = arith.constant 0 : index
    %42 = vector.load %arg15[%c0_49, %c1_50, %c1_51, %c0_52] : memref<1x10x10x128xf32, #tpu.memory_space<vmem>>, vector<1x8x8x128xf32>
    %43 = vector.shape_cast %42 : vector<1x8x8x128xf32> to vector<8x8x128xf32>
    %44 = vector.shape_cast %43 : vector<8x8x128xf32> to vector<64x128xf32>
    %c0_53 = arith.constant 0 : index
    %c512 = arith.constant 512 : index
    %45 = vector.load %arg16[%c0_53, %c512] : memref<64x1152xf32, #tpu.memory_space<vmem>>, vector<64x128xf32>
    tpu.vector_store %arg16[%c0_53, %c512], %44 {strides = array<i32>} : memref<64x1152xf32, #tpu.memory_space<vmem>>, vector<64x128xf32>,
    %c0_54 = arith.constant 0 : index
    %c1_55 = arith.constant 1 : index
    %c2_56 = arith.constant 2 : index
    %c0_57 = arith.constant 0 : index
    %46 = vector.load %arg15[%c0_54, %c1_55, %c2_56, %c0_57] : memref<1x10x10x128xf32, #tpu.memory_space<vmem>>, vector<1x8x8x128xf32>
    %47 = vector.shape_cast %46 : vector<1x8x8x128xf32> to vector<8x8x128xf32>
    %48 = vector.shape_cast %47 : vector<8x8x128xf32> to vector<64x128xf32>
    %c0_58 = arith.constant 0 : index
    %c640 = arith.constant 640 : index
    %49 = vector.load %arg16[%c0_58, %c640] : memref<64x1152xf32, #tpu.memory_space<vmem>>, vector<64x128xf32>
    tpu.vector_store %arg16[%c0_58, %c640], %48 {strides = array<i32>} : memref<64x1152xf32, #tpu.memory_space<vmem>>, vector<64x128xf32>,
    %c0_59 = arith.constant 0 : index
    %c2_60 = arith.constant 2 : index
    %c0_61 = arith.constant 0 : index
    %c0_62 = arith.constant 0 : index
    %50 = vector.load %arg15[%c0_59, %c2_60, %c0_61, %c0_62] : memref<1x10x10x128xf32, #tpu.memory_space<vmem>>, vector<1x8x8x128xf32>
    %51 = vector.shape_cast %50 : vector<1x8x8x128xf32> to vector<8x8x128xf32>
    %52 = vector.shape_cast %51 : vector<8x8x128xf32> to vector<64x128xf32>
    %c0_63 = arith.constant 0 : index
    %c768 = arith.constant 768 : index
    %53 = vector.load %arg16[%c0_63, %c768] : memref<64x1152xf32, #tpu.memory_space<vmem>>, vector<64x128xf32>
    tpu.vector_store %arg16[%c0_63, %c768], %52 {strides = array<i32>} : memref<64x1152xf32, #tpu.memory_space<vmem>>, vector<64x128xf32>,
    %c0_64 = arith.constant 0 : index
    %c2_65 = arith.constant 2 : index
    %c1_66 = arith.constant 1 : index
    %c0_67 = arith.constant 0 : index
    %54 = vector.load %arg15[%c0_64, %c2_65, %c1_66, %c0_67] : memref<1x10x10x128xf32, #tpu.memory_space<vmem>>, vector<1x8x8x128xf32>
    %55 = vector.shape_cast %54 : vector<1x8x8x128xf32> to vector<8x8x128xf32>
    %56 = vector.shape_cast %55 : vector<8x8x128xf32> to vector<64x128xf32>
    %c0_68 = arith.constant 0 : index
    %c896 = arith.constant 896 : index
    %57 = vector.load %arg16[%c0_68, %c896] : memref<64x1152xf32, #tpu.memory_space<vmem>>, vector<64x128xf32>
    tpu.vector_store %arg16[%c0_68, %c896], %56 {strides = array<i32>} : memref<64x1152xf32, #tpu.memory_space<vmem>>, vector<64x128xf32>,
    %c0_69 = arith.constant 0 : index
    %c2_70 = arith.constant 2 : index
    %c2_71 = arith.constant 2 : index
    %c0_72 = arith.constant 0 : index
    %58 = vector.load %arg15[%c0_69, %c2_70, %c2_71, %c0_72] : memref<1x10x10x128xf32, #tpu.memory_space<vmem>>, vector<1x8x8x128xf32>
    %59 = vector.shape_cast %58 : vector<1x8x8x128xf32> to vector<8x8x128xf32>
    %60 = vector.shape_cast %59 : vector<8x8x128xf32> to vector<64x128xf32>
    %c0_73 = arith.constant 0 : index
    %c1024 = arith.constant 1024 : index
    %61 = vector.load %arg16[%c0_73, %c1024] : memref<64x1152xf32, #tpu.memory_space<vmem>>, vector<64x128xf32>
    tpu.vector_store %arg16[%c0_73, %c1024], %60 {strides = array<i32>} : memref<64x1152xf32, #tpu.memory_space<vmem>>, vector<64x128xf32>,
    %c0_74 = arith.constant 0 : index
    %c0_75 = arith.constant 0 : index
    %62 = vector.load %arg16[%c0_74, %c0_75] : memref<64x1152xf32, #tpu.memory_space<vmem>>, vector<64x1152xf32>
    %c0_76 = arith.constant 0 : index
    %c0_77 = arith.constant 0 : index
    %63 = vector.load %arg10[%c0_76, %c0_77] : memref<1152x128xf32, #tpu.memory_space<vmem>>, vector<1152x128xf32>
    %cst_78 = arith.constant dense<0.000000e+00> : vector<64x128xf32>
    %64 = tpu.matmul %62, %63, %cst_78 {dimension_numbers = #tpu.dot_dimension_numbers<[1], [0], [0], [1], [0, 0, 1, 1], [], []>} : vector<64x1152xf32>, vector<1152x128xf32>, vector<64x128xf32> -> vector<64x128xf32>
    %c0_79 = arith.constant 0 : index
    %c0_80 = arith.constant 0 : index
    %65 = vector.load %arg11[%c0_79, %c0_80] : memref<1x128xf32, #tpu.memory_space<vmem>>, vector<1x128xf32>
    %66 = vector.broadcast %65 : vector<1x128xf32> to vector<64x128xf32>
    %67 = arith.addf %64, %66 : vector<64x128xf32>
    %cst_81 = arith.constant 0.000000e+00 : f32
    %68 = vector.broadcast %cst_81 : f32 to vector<64x128xf32>
    %69 = arith.maximumf %67, %68 : vector<64x128xf32>
    %70 = vector.shape_cast %69 : vector<64x128xf32> to vector<8x8x128xf32>
    %c0_82 = arith.constant 0 : index
    %c1_83 = arith.constant 1 : index
    %c1_84 = arith.constant 1 : index
    %c0_85 = arith.constant 0 : index
    %71 = vector.load %arg15[%c0_82, %c1_83, %c1_84, %c0_85] : memref<1x10x10x128xf32, #tpu.memory_space<vmem>>, vector<1x8x8x128xf32>
    %72 = vector.shape_cast %71 : vector<1x8x8x128xf32> to vector<8x8x128xf32>
    %73 = vector.shape_cast %70 : vector<8x8x128xf32> to vector<1x8x8x128xf32>
    tpu.vector_store %arg15[%c0_82, %c1_83, %c1_84, %c0_85], %73 {strides = array<i32>} : memref<1x10x10x128xf32, #tpu.memory_space<vmem>>, vector<1x8x8x128xf32>,
    %c0_86 = arith.constant 0 : index
    %c0_87 = arith.constant 0 : index
    %c0_88 = arith.constant 0 : index
    %c0_89 = arith.constant 0 : index
    %74 = vector.load %arg15[%c0_86, %c0_87, %c0_88, %c0_89] : memref<1x10x10x128xf32, #tpu.memory_space<vmem>>, vector<1x8x8x128xf32>
    %75 = vector.shape_cast %74 : vector<1x8x8x128xf32> to vector<8x8x128xf32>
    %76 = vector.shape_cast %75 : vector<8x8x128xf32> to vector<64x128xf32>
    %c0_90 = arith.constant 0 : index
    %c0_91 = arith.constant 0 : index
    %77 = vector.load %arg16[%c0_90, %c0_91] : memref<64x1152xf32, #tpu.memory_space<vmem>>, vector<64x128xf32>
    tpu.vector_store %arg16[%c0_90, %c0_91], %76 {strides = array<i32>} : memref<64x1152xf32, #tpu.memory_space<vmem>>, vector<64x128xf32>,
    %c0_92 = arith.constant 0 : index
    %c0_93 = arith.constant 0 : index
    %c1_94 = arith.constant 1 : index
    %c0_95 = arith.constant 0 : index
    %78 = vector.load %arg15[%c0_92, %c0_93, %c1_94, %c0_95] : memref<1x10x10x128xf32, #tpu.memory_space<vmem>>, vector<1x8x8x128xf32>
    %79 = vector.shape_cast %78 : vector<1x8x8x128xf32> to vector<8x8x128xf32>
    %80 = vector.shape_cast %79 : vector<8x8x128xf32> to vector<64x128xf32>
    %c0_96 = arith.constant 0 : index
    %c128_97 = arith.constant 128 : index
    %81 = vector.load %arg16[%c0_96, %c128_97] : memref<64x1152xf32, #tpu.memory_space<vmem>>, vector<64x128xf32>
    tpu.vector_store %arg16[%c0_96, %c128_97], %80 {strides = array<i32>} : memref<64x1152xf32, #tpu.memory_space<vmem>>, vector<64x128xf32>,
    %c0_98 = arith.constant 0 : index
    %c0_99 = arith.constant 0 : index
    %c2_100 = arith.constant 2 : index
    %c0_101 = arith.constant 0 : index
    %82 = vector.load %arg15[%c0_98, %c0_99, %c2_100, %c0_101] : memref<1x10x10x128xf32, #tpu.memory_space<vmem>>, vector<1x8x8x128xf32>
    %83 = vector.shape_cast %82 : vector<1x8x8x128xf32> to vector<8x8x128xf32>
    %84 = vector.shape_cast %83 : vector<8x8x128xf32> to vector<64x128xf32>
    %c0_102 = arith.constant 0 : index
    %c256_103 = arith.constant 256 : index
    %85 = vector.load %arg16[%c0_102, %c256_103] : memref<64x1152xf32, #tpu.memory_space<vmem>>, vector<64x128xf32>
    tpu.vector_store %arg16[%c0_102, %c256_103], %84 {strides = array<i32>} : memref<64x1152xf32, #tpu.memory_space<vmem>>, vector<64x128xf32>,
    %c0_104 = arith.constant 0 : index
    %c1_105 = arith.constant 1 : index
    %c0_106 = arith.constant 0 : index
    %c0_107 = arith.constant 0 : index
    %86 = vector.load %arg15[%c0_104, %c1_105, %c0_106, %c0_107] : memref<1x10x10x128xf32, #tpu.memory_space<vmem>>, vector<1x8x8x128xf32>
    %87 = vector.shape_cast %86 : vector<1x8x8x128xf32> to vector<8x8x128xf32>
    %88 = vector.shape_cast %87 : vector<8x8x128xf32> to vector<64x128xf32>
    %c0_108 = arith.constant 0 : index
    %c384_109 = arith.constant 384 : index
    %89 = vector.load %arg16[%c0_108, %c384_109] : memref<64x1152xf32, #tpu.memory_space<vmem>>, vector<64x128xf32>
    tpu.vector_store %arg16[%c0_108, %c384_109], %88 {strides = array<i32>} : memref<64x1152xf32, #tpu.memory_space<vmem>>, vector<64x128xf32>,
    %c0_110 = arith.constant 0 : index
    %c1_111 = arith.constant 1 : index
    %c1_112 = arith.constant 1 : index
    %c0_113 = arith.constant 0 : index
    %90 = vector.load %arg15[%c0_110, %c1_111, %c1_112, %c0_113] : memref<1x10x10x128xf32, #tpu.memory_space<vmem>>, vector<1x8x8x128xf32>
    %91 = vector.shape_cast %90 : vector<1x8x8x128xf32> to vector<8x8x128xf32>
    %92 = vector.shape_cast %91 : vector<8x8x128xf32> to vector<64x128xf32>
    %c0_114 = arith.constant 0 : index
    %c512_115 = arith.constant 512 : index
    %93 = vector.load %arg16[%c0_114, %c512_115] : memref<64x1152xf32, #tpu.memory_space<vmem>>, vector<64x128xf32>
    tpu.vector_store %arg16[%c0_114, %c512_115], %92 {strides = array<i32>} : memref<64x1152xf32, #tpu.memory_space<vmem>>, vector<64x128xf32>,
    %c0_116 = arith.constant 0 : index
    %c1_117 = arith.constant 1 : index
    %c2_118 = arith.constant 2 : index
    %c0_119 = arith.constant 0 : index
    %94 = vector.load %arg15[%c0_116, %c1_117, %c2_118, %c0_119] : memref<1x10x10x128xf32, #tpu.memory_space<vmem>>, vector<1x8x8x128xf32>
    %95 = vector.shape_cast %94 : vector<1x8x8x128xf32> to vector<8x8x128xf32>
    %96 = vector.shape_cast %95 : vector<8x8x128xf32> to vector<64x128xf32>
    %c0_120 = arith.constant 0 : index
    %c640_121 = arith.constant 640 : index
    %97 = vector.load %arg16[%c0_120, %c640_121] : memref<64x1152xf32, #tpu.memory_space<vmem>>, vector<64x128xf32>
    tpu.vector_store %arg16[%c0_120, %c640_121], %96 {strides = array<i32>} : memref<64x1152xf32, #tpu.memory_space<vmem>>, vector<64x128xf32>,
    %c0_122 = arith.constant 0 : index
    %c2_123 = arith.constant 2 : index
    %c0_124 = arith.constant 0 : index
    %c0_125 = arith.constant 0 : index
    %98 = vector.load %arg15[%c0_122, %c2_123, %c0_124, %c0_125] : memref<1x10x10x128xf32, #tpu.memory_space<vmem>>, vector<1x8x8x128xf32>
    %99 = vector.shape_cast %98 : vector<1x8x8x128xf32> to vector<8x8x128xf32>
    %100 = vector.shape_cast %99 : vector<8x8x128xf32> to vector<64x128xf32>
    %c0_126 = arith.constant 0 : index
    %c768_127 = arith.constant 768 : index
    %101 = vector.load %arg16[%c0_126, %c768_127] : memref<64x1152xf32, #tpu.memory_space<vmem>>, vector<64x128xf32>
    tpu.vector_store %arg16[%c0_126, %c768_127], %100 {strides = array<i32>} : memref<64x1152xf32, #tpu.memory_space<vmem>>, vector<64x128xf32>,
    %c0_128 = arith.constant 0 : index
    %c2_129 = arith.constant 2 : index
    %c1_130 = arith.constant 1 : index
    %c0_131 = arith.constant 0 : index
    %102 = vector.load %arg15[%c0_128, %c2_129, %c1_130, %c0_131] : memref<1x10x10x128xf32, #tpu.memory_space<vmem>>, vector<1x8x8x128xf32>
    %103 = vector.shape_cast %102 : vector<1x8x8x128xf32> to vector<8x8x128xf32>
    %104 = vector.shape_cast %103 : vector<8x8x128xf32> to vector<64x128xf32>
    %c0_132 = arith.constant 0 : index
    %c896_133 = arith.constant 896 : index
    %105 = vector.load %arg16[%c0_132, %c896_133] : memref<64x1152xf32, #tpu.memory_space<vmem>>, vector<64x128xf32>
    tpu.vector_store %arg16[%c0_132, %c896_133], %104 {strides = array<i32>} : memref<64x1152xf32, #tpu.memory_space<vmem>>, vector<64x128xf32>,
    %c0_134 = arith.constant 0 : index
    %c2_135 = arith.constant 2 : index
    %c2_136 = arith.constant 2 : index
    %c0_137 = arith.constant 0 : index
    %106 = vector.load %arg15[%c0_134, %c2_135, %c2_136, %c0_137] : memref<1x10x10x128xf32, #tpu.memory_space<vmem>>, vector<1x8x8x128xf32>
    %107 = vector.shape_cast %106 : vector<1x8x8x128xf32> to vector<8x8x128xf32>
    %108 = vector.shape_cast %107 : vector<8x8x128xf32> to vector<64x128xf32>
    %c0_138 = arith.constant 0 : index
    %c1024_139 = arith.constant 1024 : index
    %109 = vector.load %arg16[%c0_138, %c1024_139] : memref<64x1152xf32, #tpu.memory_space<vmem>>, vector<64x128xf32>
    tpu.vector_store %arg16[%c0_138, %c1024_139], %108 {strides = array<i32>} : memref<64x1152xf32, #tpu.memory_space<vmem>>, vector<64x128xf32>,
    %c0_140 = arith.constant 0 : index
    %c0_141 = arith.constant 0 : index
    %110 = vector.load %arg16[%c0_140, %c0_141] : memref<64x1152xf32, #tpu.memory_space<vmem>>, vector<64x1152xf32>
    %c0_142 = arith.constant 0 : index
    %c0_143 = arith.constant 0 : index
    %111 = vector.load %arg12[%c0_142, %c0_143] : memref<1152x4xf32, #tpu.memory_space<vmem>>, vector<1152x4xf32>
    %cst_144 = arith.constant dense<0.000000e+00> : vector<64x4xf32>
    %112 = tpu.matmul %110, %111, %cst_144 {dimension_numbers = #tpu.dot_dimension_numbers<[1], [0], [0], [1], [0, 0, 1, 1], [], []>} : vector<64x1152xf32>, vector<1152x4xf32>, vector<64x4xf32> -> vector<64x4xf32>
    %c0_145 = arith.constant 0 : index
    %c0_146 = arith.constant 0 : index
    %113 = vector.load %arg13[%c0_145, %c0_146] : memref<1x4xf32, #tpu.memory_space<vmem>>, vector<1x4xf32>
    %114 = vector.broadcast %113 : vector<1x4xf32> to vector<64x4xf32>
    %115 = arith.addf %112, %114 : vector<64x4xf32>
    %116 = vector.shape_cast %115 : vector<64x4xf32> to vector<1x64x4xf32>
    %c0_147 = arith.constant 0 : index
    %c0_148 = arith.constant 0 : index
    %c0_149 = arith.constant 0 : index
    %117 = vector.load %arg14[%c0_147, %c0_148, %c0_149] : memref<1x64x4xf32, #tpu.memory_space<vmem>>, vector<1x64x4xf32>
    tpu.vector_store %arg14[%c0_147, %c0_148, %c0_149], %116 {strides = array<i32>} : memref<1x64x4xf32, #tpu.memory_space<vmem>>, vector<1x64x4xf32>,
    return
  }
  func.func @transform_0(%arg0: i32) -> (i32, i32, i32) {
    %c0_i32 = arith.constant 0 : i32
    %c0_i32_0 = arith.constant 0 : i32
    %c0_i32_1 = arith.constant 0 : i32
    return %arg0, %c0_i32, %c0_i32_0 : i32, i32, i32
  }
  func.func @transform_1(%arg0: i32) -> (i32, i32) {
    %c0_i32 = arith.constant 0 : i32
    %c0_i32_0 = arith.constant 0 : i32
    %c0_i32_1 = arith.constant 0 : i32
    return %c0_i32, %c0_i32_0 : i32, i32
  }
  func.func @transform_2(%arg0: i32) -> (i32, i32) {
    %c0_i32 = arith.constant 0 : i32
    %c0_i32_0 = arith.constant 0 : i32
    %c0_i32_1 = arith.constant 0 : i32
    return %c0_i32, %c0_i32_0 : i32, i32
  }
  func.func @transform_3(%arg0: i32) -> (i32, i32) {
    %c0_i32 = arith.constant 0 : i32
    %c0_i32_0 = arith.constant 0 : i32
    %c0_i32_1 = arith.constant 0 : i32
    return %c0_i32, %c0_i32_0 : i32, i32
  }
  func.func @transform_4(%arg0: i32) -> (i32, i32) {
    %c0_i32 = arith.constant 0 : i32
    %c0_i32_0 = arith.constant 0 : i32
    %c0_i32_1 = arith.constant 0 : i32
    return %c0_i32, %c0_i32_0 : i32, i32
  }
  func.func @transform_5(%arg0: i32) -> (i32, i32) {
    %c0_i32 = arith.constant 0 : i32
    %c0_i32_0 = arith.constant 0 : i32
    %c0_i32_1 = arith.constant 0 : i32
    return %c0_i32, %c0_i32_0 : i32, i32
  }
  func.func @transform_6(%arg0: i32) -> (i32, i32) {
    %c0_i32 = arith.constant 0 : i32
    %c0_i32_0 = arith.constant 0 : i32
    %c0_i32_1 = arith.constant 0 : i32
    return %c0_i32, %c0_i32_0 : i32, i32
  }
  func.func @transform_7(%arg0: i32) -> (i32, i32) {
    %c0_i32 = arith.constant 0 : i32
    %c0_i32_0 = arith.constant 0 : i32
    %c0_i32_1 = arith.constant 0 : i32
    return %c0_i32, %c0_i32_0 : i32, i32
  }
  func.func @transform_8(%arg0: i32) -> (i32, i32) {
    %c0_i32 = arith.constant 0 : i32
    %c0_i32_0 = arith.constant 0 : i32
    %c0_i32_1 = arith.constant 0 : i32
    return %c0_i32, %c0_i32_0 : i32, i32
  }
  func.func @transform_9(%arg0: i32) -> (i32, i32) {
    %c0_i32 = arith.constant 0 : i32
    %c0_i32_0 = arith.constant 0 : i32
    %c0_i32_1 = arith.constant 0 : i32
    return %c0_i32, %c0_i32_0 : i32, i32
  }
  func.func @transform_10(%arg0: i32) -> (i32, i32) {
    %c0_i32 = arith.constant 0 : i32
    %c0_i32_0 = arith.constant 0 : i32
    %c0_i32_1 = arith.constant 0 : i32
    return %c0_i32, %c0_i32_0 : i32, i32
  }
  func.func @transform_11(%arg0: i32) -> (i32, i32) {
    %c0_i32 = arith.constant 0 : i32
    %c0_i32_0 = arith.constant 0 : i32
    %c0_i32_1 = arith.constant 0 : i32
    return %c0_i32, %c0_i32_0 : i32, i32
  }
  func.func @transform_12(%arg0: i32) -> (i32, i32) {
    %c0_i32 = arith.constant 0 : i32
    %c0_i32_0 = arith.constant 0 : i32
    %c0_i32_1 = arith.constant 0 : i32
    return %c0_i32, %c0_i32_0 : i32, i32
  }
  func.func @transform_13(%arg0: i32) -> (i32, i32, i32) {
    %c0_i32 = arith.constant 0 : i32
    %c0_i32_0 = arith.constant 0 : i32
    %c0_i32_1 = arith.constant 0 : i32
    return %arg0, %c0_i32, %c0_i32_0 : i32, i32, i32
  }
}

</mosaic_0001>

<bundles_post_ra>
// kernel: unet_forward.1
= control target key start
LH: loop header
LB: loop body
LE: loop exit
PB: predicated region body
PF: predicated region fallthrough
CT: control target
= control target key end

     0   :  { %s5630_s0 = inlined_call_operand.vmem [shape: f32[2,1,128], index: 0, kind: input, shape index: {}]   ;;  %s5631_s1 = inlined_call_operand.hbm [shape: f32[128,128], index: 1, kind: input, shape index: {}]   ;;  %s5632_s2 = inlined_call_operand.vmem [shape: f32[1,128], index: 2, kind: input, shape index: {}]   ;;  %s5633_s3 = inlined_call_operand.hbm [shape: f32[128,128], index: 3, kind: input, shape index: {}]   ;;  %s5634_s4 = inlined_call_operand.vmem [shape: f32[1,128], index: 4, kind: input, shape index: {}]   ;;  %s5635_s5 = inlined_call_operand.hbm [shape: f32[128,128], index: 5, kind: input, shape index: {}]   ;;  %s5636_s6 = inlined_call_operand.vmem [shape: f32[1,128], index: 6, kind: input, shape index: {}]   ;;  %s5637_s7 = inlined_call_operand.hbm [shape: f32[128,128], index: 7, kind: input, shape index: {}]   ;;  %s5638_s8 = inlined_call_operand.vmem [shape: f32[1,128], index: 8, kind: input, shape index: {}]   ;;  %s5639_s9 = inlined_call_operand.vmem [shape: f32[1152,128], index: 9, kind: input, shape index: {}]   ;;  %s5640_s10 = inlined_call_operand.vmem [shape: f32[1,128], index: 10, kind: input, shape index: {}]   ;;  %s5641_s11 = inlined_call_operand.vmem [shape: f32[1152,4], index: 11, kind: input, shape index: {}]   ;;  %s5642_s12 = inlined_call_operand.vmem [shape: f32[1,4], index: 12, kind: input, shape index: {}]   ;;  %s5643_s13 = inlined_call_operand.vmem [shape: f32[2,64,4], index: 13, kind: output, shape index: {}]  }
   0x1   :  { %5647 = sst [smem:[#allocation15_spill]] %s5642_s12 }
   0x2   :  { %5648 = sst [smem:[#allocation16_spill]] %s5643_s13 }
   0x3   :  { %18 = vsyncpa [#allocation5], 0 }
   0x4   :  { %19 = vsyncpa [#allocation7], 0 }
   0x5   :  { %20 = vsyncpa [#allocation10], 0  ;;  %s4274_s25 = smov 0  }
   0x6 LB: > { %5649 = sst [smem:[#allocation14_spill]] %s4193_s25  ;;  %s4280_s26 = sadd.s32 4294967295, %s4193_s25   ;;  %s4193_s25 = sphi %s4274_s25, %s26_s25  }
   0x7   : > { %p2781_p0 = scmp.ge.s32.totalorder %s4193_s25, 1  ;;  %p335_p1 = scmp.lt.s32.totalorder %s4193_s25, 3 }
   0x8   : > { %p5645_p2 = scmp.eq.s32.totalorder %s4280_s26, 0  ;;  %s4195_s28 = smov [#allocation6]  }
   0x9   : > { %p4285_p3 = pnand %p2781_p0, %p335_p1  ;;  %s363_s29 = sshll.u32 %s4195_s28, 4  ;;  %s4289_s29 = int_to_ptr.vmem [resolvable:$true] %s363_s29 }
   0xa   : > { %s4196_s30 = smov [#allocation4]   ;;  %s4197_s16 = smov [#allocation8]  }
   0xb   : > { %s5650_s27 = scalar_select %p4285_p3, 1, 0 }
   0xc   : > { %p4023_p4 = pneg %p4285_p3  ;;  %s347_s14 = sshll.u32 %s4196_s30, 4  ;;  %s4293_s14 = int_to_ptr.vmem [resolvable:$true] %s347_s14 }
   0xd   : > { %s379_s17 = sshll.u32 %s4197_s16, 4  ;;  %s4198_s18 = smov [#allocation9]   ;;  %s4301_s17 = int_to_ptr.vmem [resolvable:$true] %s379_s17 }
   0xe   : > { %p4297_p5 = pnand %p5645_p2, %p4023_p4  ;;  %s4303_s19 = sshll.u32 %s4198_s18, 4  ;;  %s396_s19 = int_to_ptr.vmem [resolvable:$true] %s4303_s19 }
   0xf   : > { %s4063_s22 = scalar_lea.hbm %s5633_s3, 2048 }
  0x10   : > { %p4064_p6 = scmp.ne.s32.totalorder %s5633_s3, %s4063_s22  ;;  %p4313_p7 = pneg %p4297_p5 }
  0x11   : > { %p4070_p10 = scmp.lt.u32.totalorder %s4063_s22, %s5633_s3 }
  0x12   : > { %p4066_p8 = pnand %p4313_p7, %p4064_p6 }
  0x14   : > { %p4067_p9 = pneg %p4066_p8 }
  0x16   : > { %p4072_p11 = pnand %p4070_p10, %p4067_p9 }
  0x18   : > { %4075 = shalt.err (!%p4072_p11)
}
  0x19   : > { %s4076_s18 = scalar_lea.vmem %s4289_s29, 2048  ;;  %p4084_p1 = scmp.lt.s32.totalorder %s4289_s29, %s4289_s29 }
  0x1a   : > { %p4077_p12 = scmp.ne.s32.totalorder %s4289_s29, %s4076_s18  ;;  %p4085_p4 = scmp.lt.s32.totalorder %s4076_s18, %s4076_s18 }
  0x1c   : > { %p4079_p13 = pnand %p4077_p12, %p4313_p7  ;;  %p4086_p6 = por %p4085_p4, %p4084_p1 }
  0x1e   : > { %p4080_p0 = pneg %p4079_p13 }
  0x20   : > { %p4087_p8 = pnand %p4086_p6, %p4080_p0 }
  0x22   : > { %4090 = shalt.err (!%p4087_p8)
}
  0x23   : > { %s4199_s20 = smov 128   ;;  %s4200_s21 = smov 8  }
  0x24   : > { %4029 = dma.hbm_to_vmem [thread:$0]  (!%p4297_p5), %s5633_s3, 2048, %s4289_s29, [#allocation7], %s4199_s20, %s4199_s20, %s4200_s21  }
  0x25   : > { %s4091_s16 = scalar_lea.hbm %s5631_s1, 2048 }
  0x26   : > { %p4092_p9 = scmp.ne.s32.totalorder %s5631_s1, %s4091_s16  ;;  %p4098_p12 = scmp.lt.u32.totalorder %s4091_s16, %s5631_s1 }
  0x28   : > { %p4094_p10 = pnand %p4092_p9, %p4313_p7 }
  0x2a   : > { %p4095_p11 = pneg %p4094_p10 }
  0x2c   : > { %p4100_p13 = pnand %p4098_p12, %p4095_p11 }
  0x2e   : > { %4103 = shalt.err (!%p4100_p13)
}
  0x2f   : > { %s4104_s29 = scalar_lea.vmem %s4293_s14, 2048  ;;  %p4112_p6 = scmp.lt.s32.totalorder %s4293_s14, %s4293_s14 }
  0x30   : > { %p4105_p0 = scmp.ne.s32.totalorder %s4293_s14, %s4104_s29  ;;  %p4113_p8 = scmp.lt.s32.totalorder %s4104_s29, %s4104_s29 }
  0x32   : > { %p4107_p1 = pnand %p4105_p0, %p4313_p7  ;;  %p4114_p9 = por %p4113_p8, %p4112_p6 }
  0x34   : > { %p4108_p4 = pneg %p4107_p1 }
  0x36   : > { %p4115_p10 = pnand %p4114_p9, %p4108_p4 }
  0x38   : > { %4118 = shalt.err (!%p4115_p10)
}
  0x39   : > { %4026 = dma.hbm_to_vmem [thread:$0]  (!%p4297_p5), %s5631_s1, 2048, %s4293_s14, [#allocation5], %s4199_s20, %s4199_s20, %s4200_s21  }
  0x3a   : > { %s4119_s23 = scalar_lea.hbm %s5635_s5, 2048 }
  0x3b   : > { %p4120_p11 = scmp.ne.s32.totalorder %s5635_s5, %s4119_s23  ;;  %p4126_p0 = scmp.lt.u32.totalorder %s4119_s23, %s5635_s5 }
  0x3d   : > { %p4122_p12 = pnand %p4120_p11, %p4313_p7 }
  0x3f   : > { %p4123_p13 = pneg %p4122_p12 }
  0x41   : > { %p4128_p1 = pnand %p4126_p0, %p4123_p13 }
  0x43   : > { %4131 = shalt.err (!%p4128_p1)
}
  0x44   : > { %s4132_s14 = scalar_lea.vmem %s4301_s17, 2048  ;;  %p4140_p9 = scmp.lt.s32.totalorder %s4301_s17, %s4301_s17 }
  0x45   : > { %p4133_p4 = scmp.ne.s32.totalorder %s4301_s17, %s4132_s14  ;;  %p4141_p10 = scmp.lt.s32.totalorder %s4132_s14, %s4132_s14 }
  0x47   : > { %p4135_p6 = pnand %p4133_p4, %p4313_p7  ;;  %p4142_p11 = por %p4141_p10, %p4140_p9 }
  0x49   : > { %p4136_p8 = pneg %p4135_p6 }
  0x4b   : > { %p4143_p12 = pnand %p4142_p11, %p4136_p8 }
  0x4d   : > { %4146 = shalt.err (!%p4143_p12)
}
  0x4e   : > { %4032 = dma.hbm_to_vmem [thread:$0]  (!%p4297_p5), %s5635_s5, 2048, %s4301_s17, [#allocation7], %s4199_s20, %s4199_s20, %s4200_s21  }
  0x4f   : > { %s4147_s22 = scalar_lea.hbm %s5637_s7, 2048 }
  0x50   : > { %p4148_p13 = scmp.ne.s32.totalorder %s5637_s7, %s4147_s22  ;;  %p4154_p4 = scmp.lt.u32.totalorder %s4147_s22, %s5637_s7 }
  0x52   : > { %p4150_p0 = pnand %p4148_p13, %p4313_p7 }
  0x54   : > { %p4151_p1 = pneg %p4150_p0 }
  0x56   : > { %p4156_p6 = pnand %p4154_p4, %p4151_p1 }
  0x58   : > { %4159 = shalt.err (!%p4156_p6)
}
  0x59   : > { %s4160_s18 = scalar_lea.vmem %s396_s19, 2048  ;;  %p4168_p11 = scmp.lt.s32.totalorder %s396_s19, %s396_s19 }
  0x5a   : > { %p4161_p8 = scmp.ne.s32.totalorder %s396_s19, %s4160_s18  ;;  %p4169_p12 = scmp.lt.s32.totalorder %s4160_s18, %s4160_s18 }
  0x5c   : > { %p4163_p9 = pnand %p4161_p8, %p4313_p7  ;;  %p4170_p2 = por %p4169_p12, %p4168_p11 }
  0x5e   : > { %p4164_p10 = pneg %p4163_p9 }
  0x60   : > { %p4171_p3 = pnand %p4170_p2, %p4164_p10 }
  0x62   : > { %4174 = shalt.err (!%p4171_p3)
}
  0x63   : > { %4035 = dma.hbm_to_vmem [thread:$0]  (!%p4297_p5), %s5637_s7, 2048, %s396_s19, [#allocation10], %s4199_s20, %s4199_s20, %s4200_s21  }
  0x64   : > { %p5653_p13 = scmp.ne.s32.totalorder %s5650_s27, 0 }
  0x65   : > { %p5654_p7 = scmp.eq.s32.totalorder (!%p5653_p13), %s4280_s26, 0 }
  0x66   : > { %432 = sbr.rel (%p5653_p13) target bundleno = 1591 (0x637), region = 72 }
  0x6d   : > { %4180 = dma.done.wait (%p5654_p7), [#allocation5], 2048   ;;  %p5655_p0 = pmov %p5654_p7 }
  0x6f   : > { %4182 = vsyncadd (%p5655_p0), [#allocation5], 4294965248  ;;  %p5656_p2 = pmov %p5655_p0 }
  0x70   : > { %p5657_p3 = pmov %p5655_p0 }
  0x71   : > { %4184 = dma.done.wait (%p5656_p2), [#allocation7], 4096  }
  0x72   : > { %4186 = vsyncadd (%p5657_p3), [#allocation7], 4294963200  ;;  %p5658_p1 = pmov %p5655_p0 }
  0x73   : > { %p5659_p5 = pmov %p5655_p0 }
  0x74   : > { %4188 = dma.done.wait (%p5658_p1), [#allocation10], 2048  }
  0x75   : > { %4190 = vsyncadd (%p5659_p5), [#allocation10], 4294965248  ;;  %v4201_v0 = vmov 0.0|0.0   ;;  %vm4202_vm0 = vmmov 0   ;;  %v4203_v1 = vmov 0.0   ;;  %v495_v2 = vld [vmem:[#allocation4] sm:$0xff] }
  0x76   : > { %3591 = vmatprep.subr.bf16.mxu0 %v4201_v0  ;;  %3395 = vmatprep.mubr.msk.f32.mxu0 %vm4202_vm0, %v4203_v1  ;;  %843 = vst [vmem:[#allocation2] sm:$0xff] %v4203_v1  ;;  %844 = vst [vmem:[#allocation2 + $0x8] sm:$0x3] %v4203_v1  ;;  %v496_v3 = vld [vmem:[#allocation4 + $0x8] sm:$0xff]  ;;  %v497_v4 = vld [vmem:[#allocation4 + $0x10] sm:$0xff]  ;;  %p486_p4 = scmp.lt.s32.totalorder %s4280_s26, 1 }
  0x77   : > { %845 = vst [vmem:[#allocation2 + $0x10] sm:$0xff] %v4203_v1  ;;  %846 = vst [vmem:[#allocation2 + $0x18] sm:$0x3] %v4203_v1  ;;  %3615 = vmatprep.subr.bf16.mxu1 %v4201_v0  ;;  %3430 = vmatprep.mubr.msk.f32.mxu1 %vm4202_vm0, %v4203_v1  ;;  %v3592_v5 = vpack.c.bf16 %v496_v3, %v495_v2  ;;  %v498_v6 = vld [vmem:[#allocation4 + $0x18] sm:$0xff]  ;;  %v499_v8 = vld [vmem:[#allocation4 + $0x20] sm:$0xff]  ;;  %s5660_s18 = sld [smem:[#allocation15_spill]] }
  0x78   : > { %847 = vst [vmem:[#allocation2 + $0x20] sm:$0xff] %v4203_v1  ;;  %848 = vst [vmem:[#allocation2 + $0x28] sm:$0x3] %v4203_v1  ;;  %v3595_v7 = vpack.c.bf16 %v498_v6, %v497_v4  ;;  %v500_v9 = vld [vmem:[#allocation4 + $0x28] sm:$0xff]  ;;  %v582_v10 = vld [vmem:[#allocation6] sm:$0xff]  ;;  %s5664_s26 = smov (!%p486_p4, %s4280_s26), 1 }
  0x79   : > { %849 = vst [vmem:[#allocation2 + $0x30] sm:$0xff] %v4203_v1  ;;  %850 = vst [vmem:[#allocation2 + $0x38] sm:$0x3] %v4203_v1  ;;  %3593 = vmatpush3.bf16.msra.mxu0 %v3592_v5  ;;  %v583_v11 = vld [vmem:[#allocation6 + $0x8] sm:$0xff]  ;;  %v584_v12 = vld [vmem:[#allocation6 + $0x10] sm:$0xff]  ;;  %v3598_v14 = vpack.c.bf16 %v500_v9, %v499_v8  ;;  %s488_s19 = scalar_lea.vmem %s5630_s0, %s5664_s26  ;;  %s2798_s17 = sshll.u32 %s5664_s26, 6 }
  0x7a   : > { %851 = vst [vmem:[#allocation2 + $0x40] sm:$0xff] %v4203_v1  ;;  %852 = vst [vmem:[#allocation2 + $0x48] sm:$0x3] %v4203_v1  ;;  %3594 = vmatprep.subr.bf16.mxu0 %v4201_v0  ;;  %v585_v13 = vld [vmem:[#allocation6 + $0x18] sm:$0xff]  ;;  %v3616_v15 = vpack.c.bf16 %v583_v11, %v582_v10  ;;  %v501_v16 = vld [vmem:[#allocation4 + $0x30] sm:$0xff]  ;;  %s5661_s15 = sld [smem:[#allocation16_spill]] }
  0x7b   : > { %853 = vst [vmem:[#allocation2 + $0x50] sm:$0xff] %v4203_v1  ;;  %854 = vst [vmem:[#allocation2 + $0x58] sm:$0x3] %v4203_v1  ;;  %v502_v17 = vld [vmem:[#allocation4 + $0x38] sm:$0xff]  ;;  %v3619_v18 = vpack.c.bf16 %v585_v13, %v584_v12  ;;  %v586_v19 = vld [vmem:[#allocation6 + $0x20] sm:$0xff]  ;;  %vm2677_vm1 = vcmask 31744  }
  0x7c   : > { %855 = vst [vmem:[#allocation2 + $0x60] sm:$0xff] %v4203_v1  ;;  %856 = vst [vmem:[#allocation2 + $0x68] sm:$0x3] %v4203_v1  ;;  %3617 = vmatpush3.bf16.msra.mxu1 %v3616_v15  ;;  %v587_v20 = vld [vmem:[#allocation6 + $0x28] sm:$0xff]  ;;  %v3601_v21 = vpack.c.bf16 %v502_v17, %v501_v16  ;;  %v503_v22 = vld [vmem:[#allocation4 + $0x40] sm:$0xff] }
  0x7d   : > { %857 = vst [vmem:[#allocation2 + $0x70] sm:$0xff] %v4203_v1  ;;  %858 = vst [vmem:[#allocation2 + $0x78] sm:$0x3] %v4203_v1  ;;  %3596 = vmatpush3.bf16.msra.mxu0 %v3595_v7  ;;  %3618 = vmatprep.subr.bf16.mxu1 %v4201_v0  ;;  %v504_v23 = vld [vmem:[#allocation4 + $0x48] sm:$0xff]  ;;  %v3622_v24 = vpack.c.bf16 %v587_v20, %v586_v19  ;;  %v588_v25 = vld [vmem:[#allocation6 + $0x30] sm:$0xff] }
  0x7e   : > { %859 = vst [vmem:[#allocation2 + $0x80] sm:$0xff] %v4203_v1  ;;  %860 = vst [vmem:[#allocation2 + $0x88] sm:$0x3] %v4203_v1  ;;  %3597 = vmatprep.subr.bf16.mxu0 %v4201_v0  ;;  %v589_v26 = vld [vmem:[#allocation6 + $0x38] sm:$0xff]  ;;  %v3604_v27 = vpack.c.bf16 %v504_v23, %v503_v22  ;;  %v505_v28 = vld [vmem:[#allocation4 + $0x50] sm:$0xff] }
  0x7f   : > { %861 = vst [vmem:[#allocation2 + $0x90] sm:$0xff] %v4203_v1  ;;  %862 = vst [vmem:[#allocation2 + $0x98] sm:$0x3] %v4203_v1  ;;  %v506_v29 = vld [vmem:[#allocation4 + $0x58] sm:$0xff]  ;;  %v3625_v30 = vpack.c.bf16 %v589_v26, %v588_v25  ;;  %v590_v31 = vld [vmem:[#allocation6 + $0x40] sm:$0xff] }
  0x80   : > { %3620 = vmatpush3.bf16.msra.mxu1 %v3619_v18  ;;  %v591_v32 = vld [vmem:[#allocation6 + $0x48] sm:$0xff]  ;;  %v3607_v33 = vpack.c.bf16 %v506_v29, %v505_v28  ;;  %v507_v34 = vld [vmem:[#allocation4 + $0x60] sm:$0xff]  ;;  %v592_v37 = vld [vmem:[#allocation6 + $0x50] sm:$0xff] }
  0x81   : > { %3599 = vmatpush3.bf16.msra.mxu0 %v3598_v14  ;;  %3621 = vmatprep.subr.bf16.mxu1 %v4201_v0  ;;  %v508_v35 = vld [vmem:[#allocation4 + $0x68] sm:$0xff]  ;;  %v3628_v36 = vpack.c.bf16 %v591_v32, %v590_v31  ;;  %v593_v38 = vld [vmem:[#allocation6 + $0x58] sm:$0xff]  ;;  %v509_v40 = vld [vmem:[#allocation4 + $0x70] sm:$0xff] }
  0x82   : > { %3600 = vmatprep.subr.bf16.mxu0 %v4201_v0  ;;  %v3610_v39 = vpack.c.bf16 %v508_v35, %v507_v34  ;;  %v510_v41 = vld [vmem:[#allocation4 + $0x78] sm:$0xff]  ;;  %v3631_v42 = vpack.c.bf16 %v593_v38, %v592_v37  ;;  %v594_v43 = vld [vmem:[#allocation6 + $0x60] sm:$0xff]  ;;  %v595_v44 = vld [vmem:[#allocation6 + $0x68] sm:$0xff] }
  0x83   : > { %v3613_v45 = vpack.c.bf16 %v510_v41, %v509_v40  ;;  %v3634_v46 = vpack.c.bf16 %v595_v44, %v594_v43  ;;  %v494_v47 = vld [vmem:[%s488_s19] sm:$0x1]  ;;  %v596_v48 = vld [vmem:[#allocation6 + $0x70] sm:$0xff]  ;;  %v597_v49 = vld [vmem:[#allocation6 + $0x78] sm:$0xff]  ;;  %s5609_s19 = scalar_lea.vmem %s5661_s15, %s2798_s17 }
  0x84   : > { %3623 = vmatpush3.bf16.msra.mxu1 %v3622_v24  ;;  %v3637_v50 = vpack.c.bf16 %v597_v49, %v596_v48  ;;  %v669_v51 = vld [vmem:[#allocation8] sm:$0xff]  ;;  %v670_v52 = vld [vmem:[#allocation8 + $0x8] sm:$0xff]  ;;  %v671_v53 = vld [vmem:[#allocation8 + $0x10] sm:$0xff] }
  0x85   : > { %3602 = vmatpush3.bf16.msra.mxu0 %v3601_v21  ;;  %3624 = vmatprep.subr.bf16.mxu1 %v4201_v0  ;;  %v3640_v54 = vpack.c.bf16 %v670_v52, %v669_v51  ;;  %v672_v55 = vld [vmem:[#allocation8 + $0x18] sm:$0xff]  ;;  %v673_v57 = vld [vmem:[#allocation8 + $0x20] sm:$0xff]  ;;  %v674_v58 = vld [vmem:[#allocation8 + $0x28] sm:$0xff] }
  0x86   : > { %3603 = vmatprep.subr.bf16.mxu0 %v4201_v0  ;;  %v3643_v56 = vpack.c.bf16 %v672_v55, %v671_v53  ;;  %v3646_v59 = vpack.c.bf16 %v674_v58, %v673_v57  ;;  %v675_v60 = vld [vmem:[#allocation8 + $0x30] sm:$0xff]  ;;  %v676_v61 = vld [vmem:[#allocation8 + $0x38] sm:$0xff]  ;;  %v677_v63 = vld [vmem:[#allocation8 + $0x40] sm:$0xff] }
  0x87   : > { %v3649_v62 = vpack.c.bf16 %v676_v61, %v675_v60  ;;  %v678_v2 = vld [vmem:[#allocation8 + $0x48] sm:$0xff]  ;;  %v679_v4 = vld [vmem:[#allocation8 + $0x50] sm:$0xff]  ;;  %v680_v5 = vld [vmem:[#allocation8 + $0x58] sm:$0xff] }
  0x88   : > { %3626 = vmatpush3.bf16.msra.mxu1 %v3625_v30  ;;  %v3652_v3 = vpack.c.bf16 %v678_v2, %v677_v63  ;;  %v3655_v6 = vpack.c.bf16 %v680_v5, %v679_v4  ;;  %v681_v7 = vld [vmem:[#allocation8 + $0x60] sm:$0xff]  ;;  %v682_v8 = vld [vmem:[#allocation8 + $0x68] sm:$0xff]  ;;  %v683_v14 = vld [vmem:[#allocation8 + $0x70] sm:$0xff] }
  0x89   : > { %3605 = vmatpush3.bf16.msra.mxu0 %v3604_v27  ;;  %3627 = vmatprep.subr.bf16.mxu1 %v4201_v0  ;;  %v3658_v9 = vpack.c.bf16 %v682_v8, %v681_v7  ;;  %v511_v10 = vld [vmem:[%s5632_s2] sm:$0x1]  ;;  %v684_v15 = vld [vmem:[#allocation8 + $0x78] sm:$0xff]  ;;  %v757_v18 = vld [vmem:[#allocation9 + $0x8] sm:$0xff] }
  0x8a   : > { %3606 = vmatprep.subr.bf16.mxu0 %v4201_v0  ;;  %v3661_v16 = vpack.c.bf16 %v684_v15, %v683_v14  ;;  %v756_v17 = vld [vmem:[#allocation9] sm:$0xff]  ;;  %v758_v19 = vld [vmem:[#allocation9 + $0x10] sm:$0xff]  ;;  %v759_v21 = vld [vmem:[#allocation9 + $0x18] sm:$0xff] }
  0x8b   : > { %v3664_v20 = vpack.c.bf16 %v757_v18, %v756_v17  ;;  %v3667_v22 = vpack.c.bf16 %v759_v21, %v758_v19  ;;  %v760_v23 = vld [vmem:[#allocation9 + $0x20] sm:$0xff]  ;;  %v761_v24 = vld [vmem:[#allocation9 + $0x28] sm:$0xff]  ;;  %v762_v26 = vld [vmem:[#allocation9 + $0x30] sm:$0xff] }
  0x8c   : > { %3629 = vmatpush3.bf16.msra.mxu1 %v3628_v36  ;;  %v3670_v25 = vpack.c.bf16 %v761_v24, %v760_v23  ;;  %v763_v27 = vld [vmem:[#allocation9 + $0x38] sm:$0xff]  ;;  %v764_v29 = vld [vmem:[#allocation9 + $0x40] sm:$0xff]  ;;  %v765_v30 = vld [vmem:[#allocation9 + $0x48] sm:$0xff] }
  0x8d   : > { %3608 = vmatpush3.bf16.msra.mxu0 %v3607_v33  ;;  %3630 = vmatprep.subr.bf16.mxu1 %v4201_v0  ;;  %v3673_v28 = vpack.c.bf16 %v763_v27, %v762_v26  ;;  %v3676_v31 = vpack.c.bf16 %v765_v30, %v764_v29  ;;  %v766_v32 = vld [vmem:[#allocation9 + $0x50] sm:$0xff]  ;;  %v767_v33 = vld [vmem:[#allocation9 + $0x58] sm:$0xff]  ;;  %v768_v35 = vld [vmem:[#allocation9 + $0x60] sm:$0xff] }
  0x8e   : > { %3609 = vmatprep.subr.bf16.mxu0 %v4201_v0  ;;  %v3679_v34 = vpack.c.bf16 %v767_v33, %v766_v32  ;;  %v769_v36 = vld [vmem:[#allocation9 + $0x68] sm:$0xff]  ;;  %v598_v38 = vld [vmem:[%s5634_s4] sm:$0x1]  ;;  %v771_v43 = vld [vmem:[#allocation9 + $0x78] sm:$0xff] }
  0x8f   : > { %v3682_v37 = vpack.c.bf16 %v769_v36, %v768_v35  ;;  %v1094_v48 = vld [vmem:[%s5639_s9 + $0x8] sm:$0xff]  ;;  %v1111_v49 = vld [vmem:[%s5639_s9 + $0x90] sm:$0xff]  ;;  %v1141_v55 = vld [vmem:[%s5639_s9 + $0x180] sm:$0xff] }
  0x90   : > { %3632 = vmatpush3.bf16.msra.mxu1 %v3631_v42  ;;  %v770_v42 = vld [vmem:[#allocation9 + $0x70] sm:$0xff]  ;;  %v1114_v60 = vld [vmem:[%s5639_s9 + $0xa8] sm:$0xff]  ;;  %v1100_v7 = vld [vmem:[%s5639_s9 + $0x38] sm:$0xff] }
  0x91   : > { %3611 = vmatpush3.bf16.msra.mxu0 %v3610_v39  ;;  %3633 = vmatprep.subr.bf16.mxu1 %v4201_v0  ;;  %v3685_v44 = vpack.c.bf16 %v771_v43, %v770_v42  ;;  %v1095_v53 = vld [vmem:[%s5639_s9 + $0x10] sm:$0xff]  ;;  %v1098_v63 = vld [vmem:[%s5639_s9 + $0x28] sm:$0xff]  ;;  %v1117_v8 = vld [vmem:[%s5639_s9 + $0xc0] sm:$0xff] }
  0x92   : > { %3612 = vmatprep.subr.bf16.mxu0 %v4201_v0  ;;  %v1115_v2 = vld [vmem:[%s5639_s9 + $0xb0] sm:$0xff]  ;;  %v1120_v15 = vld [vmem:[%s5639_s9 + $0xd8] sm:$0xff]  ;;  %v1125_v21 = vld [vmem:[%s5639_s9 + $0x100] sm:$0xff] }
  0x93   : > { %v1119_v14 = vld [vmem:[%s5639_s9 + $0xd0] sm:$0xff]  ;;  %v1104_v19 = vld [vmem:[%s5639_s9 + $0x58] sm:$0xff]  ;;  %v685_v23 = vld [vmem:[%s5636_s6] sm:$0x1] }
  0x94   : > { %3635 = vmatpush3.bf16.msra.mxu1 %v3634_v46  ;;  %v1093_v46 = vld [vmem:[%s5639_s9] sm:$0xff]  ;;  %v3707_v17 = vpack.c.bf16 %v1120_v15, %v1119_v14  ;;  %v1103_v18 = vld [vmem:[%s5639_s9 + $0x50] sm:$0xff]  ;;  %v1128_v32 = vld [vmem:[%s5639_s9 + $0x118] sm:$0xff] }
  0x95   : > { %3614 = vmatpush3.bf16.msra.mxu0 %v3613_v45  ;;  %3636 = vmatprep.subr.bf16.mxu1 %v4201_v0  ;;  %v1109_v45 = vld [vmem:[%s5639_s9 + $0x80] sm:$0xff]  ;;  %v3689_v51 = vpack.c.bf16 %v1094_v48, %v1093_v46  ;;  %v1143_v24 = vld [vmem:[%s5639_s9 + $0x190] sm:$0xff]  ;;  %v1174_v15 = vld [vmem:[%s5639_s9 + $0x288] sm:$0xff] }
  0x96   : > { %3639 = vmatprep.subr.bf16.mxu0 %v4201_v0  ;;  %v1145_v33 = vld [vmem:[%s5639_s9 + $0x1a0] sm:$0xff]  ;;  %v1131_v43 = vld [vmem:[%s5639_s9 + $0x130] sm:$0xff] }
  0x97   : > { %v1133_v48 = vld [vmem:[%s5639_s9 + $0x140] sm:$0xff] }
  0x98   : > { %3396 = vmatmul.mubr.f32.vlgmr.msra.gmra.mrb[0].mxu0 %v494_v47  ;;  %3638 = vmatpush3.bf16.msra.mxu1 %v3637_v50  ;;  %v1112_v50 = vld [vmem:[%s5639_s9 + $0x98] sm:$0xff]  ;;  %v1173_v14 = vld [vmem:[%s5639_s9 + $0x280] sm:$0xff] }
  0x99   : > { %3465 = vmatprep.mubr.msk.f32.mxu0 %vm4202_vm0, %v4203_v1  ;;  %3663 = vmatprep.subr.bf16.mxu1 %v4201_v0  ;;  %v3691_v52 = vpack.c.bf16 %v1112_v50, %v1111_v49  ;;  %v1134_v49 = vld [vmem:[%s5639_s9 + $0x148] sm:$0xff] }
  0x9a   : > { %3641 = vmatpush3.bf16.msra.mxu0 %v3640_v54  ;;  %v1096_v54 = vld [vmem:[%s5639_s9 + $0x18] sm:$0xff]  ;;  %v3737_v50 = vpack.c.bf16 %v1134_v49, %v1133_v48  ;;  %v1165_v48 = vld [vmem:[%s5639_s9 + $0x240] sm:$0xff]  ;;  %v1166_v49 = vld [vmem:[%s5639_s9 + $0x248] sm:$0xff] }
  0x9b   : > { %3642 = vmatprep.subr.bf16.mxu0 %v4201_v0  ;;  %v3693_v57 = vpack.c.bf16 %v1096_v54, %v1095_v53  ;;  %v1105_v54 = vld [vmem:[%s5639_s9 + $0x60] sm:$0xff] }
  0x9e   : > { %3644 = vmatpush3.bf16.msra.mxu0 %v3643_v56  ;;  %v1142_v56 = vld [vmem:[%s5639_s9 + $0x188] sm:$0xff] }
  0x9f   : > { %3645 = vmatprep.subr.bf16.mxu0 %v4201_v0  ;;  %v3719_v58 = vpack.c.bf16 %v1142_v56, %v1141_v55  ;;  %v1106_v55 = vld [vmem:[%s5639_s9 + $0x68] sm:$0xff] }
  0xa0   : > { %v3713_v56 = vpack.c.bf16 %v1106_v55, %v1105_v54  ;;  %v1167_v54 = vld [vmem:[%s5639_s9 + $0x250] sm:$0xff]  ;;  %v1168_v55 = vld [vmem:[%s5639_s9 + $0x258] sm:$0xff] }
  0xa2   : > { %3647 = vmatpush3.bf16.msra.mxu0 %v3646_v59  ;;  %v1113_v59 = vld [vmem:[%s5639_s9 + $0xa0] sm:$0xff] }
  0xa3   : > { %3648 = vmatprep.subr.bf16.mxu0 %v4201_v0  ;;  %v3695_v61 = vpack.c.bf16 %v1114_v60, %v1113_v59  ;;  %v1107_v60 = vld [vmem:[%s5639_s9 + $0x70] sm:$0xff] }
  0xa6   : > { %3650 = vmatpush3.bf16.msra.mxu0 %v3649_v62  ;;  %v1097_v62 = vld [vmem:[%s5639_s9 + $0x20] sm:$0xff] }
  0xa7   : > { %3651 = vmatprep.subr.bf16.mxu0 %v4201_v0  ;;  %v3697_v4 = vpack.c.bf16 %v1098_v63, %v1097_v62  ;;  %v1151_v62 = vld [vmem:[%s5639_s9 + $0x1d0] sm:$0xff]  ;;  %v1152_v63 = vld [vmem:[%s5639_s9 + $0x1d8] sm:$0xff] }
  0xaa   : > { %3653 = vmatpush3.bf16.msra.mxu0 %v3652_v3  ;;  %v1116_v3 = vld [vmem:[%s5639_s9 + $0xb8] sm:$0xff] }
  0xab   : > { %3654 = vmatprep.subr.bf16.mxu0 %v4201_v0  ;;  %v3699_v5 = vpack.c.bf16 %v1116_v3, %v1115_v2  ;;  %v3739_v3 = vpack.c.bf16 %v1152_v63, %v1151_v62  ;;  %v1187_v63 = vld [vmem:[%s5639_s9 + $0x2f0] sm:$0xff] }
  0xae   : > { %3656 = vmatpush3.bf16.msra.mxu0 %v3655_v6  ;;  %v1099_v6 = vld [vmem:[%s5639_s9 + $0x30] sm:$0xff] }
  0xaf   : > { %3657 = vmatprep.subr.bf16.mxu0 %v4201_v0 }
  0xb2   : > { %3659 = vmatpush3.bf16.msra.mxu0 %v3658_v9  ;;  %v1118_v9 = vld [vmem:[%s5639_s9 + $0xc8] sm:$0xff] }
  0xb3   : > { %3660 = vmatprep.subr.bf16.mxu0 %v4201_v0 }
  0xb6   : > { %3662 = vmatpush3.bf16.msra.mxu0 %v3661_v16 }
 0x16b   : > { %v578_v11 = vpop.f32.mrb[0].mxu0 }
 0x16c   : > { %v579_v12 = vadd.f32 %v578_v11, %v511_v10  ;;  %v3397_v13 = vpop.f32.mrb[1].mxu0  ;;  %v3701_v10 = vpack.c.bf16 %v1100_v7, %v1099_v6  ;;  %v3703_v11 = vpack.c.bf16 %v1118_v9, %v1117_v8  ;;  %v892_v7 = vld [vmem:[#allocation2 + $0x1] sm:$0xff] }
 0x16d   : > { %v1102_v13 = vld [vmem:[%s5639_s9 + $0x48] sm:$0xff]  ;;  %v1153_v8 = vld [vmem:[%s5639_s9 + $0x1e0] sm:$0xff] }
 0x16e   : > { %3431 = vmatmul.mubr.f32.vlgmr.msra.gmra.mrb[0].mxu1 %v579_v12  ;;  %v1101_v12 = vld [vmem:[%s5639_s9 + $0x40] sm:$0xff]  ;;  %v1154_v9 = vld [vmem:[%s5639_s9 + $0x1e8] sm:$0xff] }
 0x16f   : > { %3500 = vmatprep.mubr.msk.f32.mxu1 %vm4202_vm0, %v4203_v1  ;;  %3665 = vmatpush3.bf16.msra.mxu1 %v3664_v20  ;;  %v3705_v16 = vpack.c.bf16 %v1102_v13, %v1101_v12  ;;  %v3709_v20 = vpack.c.bf16 %v1104_v19, %v1103_v18  ;;  %v1138_v12 = vld [vmem:[%s5639_s9 + $0x168] sm:$0xff]  ;;  %v1156_v18 = vld [vmem:[%s5639_s9 + $0x1f8] sm:$0xff] }
 0x170   : > { %3666 = vmatprep.subr.bf16.mxu1 %v4201_v0  ;;  %v1158_v19 = vld [vmem:[%s5639_s9 + $0x208] sm:$0xff] }
 0x173   : > { %3668 = vmatpush3.bf16.msra.mxu1 %v3667_v22  ;;  %v1126_v22 = vld [vmem:[%s5639_s9 + $0x108] sm:$0xff] }
 0x174   : > { %3669 = vmatprep.subr.bf16.mxu1 %v4201_v0  ;;  %v3721_v27 = vpack.c.bf16 %v1126_v22, %v1125_v21  ;;  %v1139_v22 = vld [vmem:[%s5639_s9 + $0x170] sm:$0xff] }
 0x177   : > { %3671 = vmatpush3.bf16.msra.mxu1 %v3670_v25  ;;  %v1144_v25 = vld [vmem:[%s5639_s9 + $0x198] sm:$0xff] }
 0x178   : > { %3672 = vmatprep.subr.bf16.mxu1 %v4201_v0  ;;  %v3723_v30 = vpack.c.bf16 %v1144_v25, %v1143_v24  ;;  %v1175_v25 = vld [vmem:[%s5639_s9 + $0x290] sm:$0xff] }
 0x17b   : > { %3674 = vmatpush3.bf16.msra.mxu1 %v3673_v28 }
 0x17c   : > { %3675 = vmatprep.subr.bf16.mxu1 %v4201_v0 }
 0x17f   : > { %3677 = vmatpush3.bf16.msra.mxu1 %v3676_v31  ;;  %v1127_v31 = vld [vmem:[%s5639_s9 + $0x110] sm:$0xff] }
 0x180   : > { %3678 = vmatprep.subr.bf16.mxu1 %v4201_v0  ;;  %v3725_v35 = vpack.c.bf16 %v1128_v32, %v1127_v31  ;;  %v1206_v32 = vld [vmem:[%s5639_s9 + $0x388] sm:$0xff] }
 0x183   : > { %3680 = vmatpush3.bf16.msra.mxu1 %v3679_v34  ;;  %v1146_v34 = vld [vmem:[%s5639_s9 + $0x1a8] sm:$0xff] }
 0x184   : > { %3681 = vmatprep.subr.bf16.mxu1 %v4201_v0  ;;  %v3727_v36 = vpack.c.bf16 %v1146_v34, %v1145_v33  ;;  %v1177_v34 = vld [vmem:[%s5639_s9 + $0x2a0] sm:$0xff] }
 0x187   : > { %3683 = vmatpush3.bf16.msra.mxu1 %v3682_v37  ;;  %v1129_v37 = vld [vmem:[%s5639_s9 + $0x120] sm:$0xff] }
 0x188   : > { %3684 = vmatprep.subr.bf16.mxu1 %v4201_v0  ;;  %v1110_v0 = vld [vmem:[%s5639_s9 + $0x88] sm:$0xff] }
 0x189   : > { %v3687_v47 = vpack.c.bf16 %v1110_v0, %v1109_v45  ;;  %v1149_v45 = vld [vmem:[%s5639_s9 + $0x1c0] sm:$0xff]  ;;  %v1150_v0 = vld [vmem:[%s5639_s9 + $0x1c8] sm:$0xff] }
 0x18b   : > { %3686 = vmatpush3.bf16.msra.mxu1 %v3685_v44  ;;  %3688 = vmatprep.subr.bf16.mxu0 %v3687_v47  ;;  %v1132_v44 = vld [vmem:[%s5639_s9 + $0x138] sm:$0xff]  ;;  %v3735_v47 = vpack.c.bf16 %v1150_v0, %v1149_v45  ;;  %v1181_v0 = vld [vmem:[%s5639_s9 + $0x2c0] sm:$0xff] }
 0x18c   : > { %3720 = vmatprep.subr.bf16.mxu1 %v3719_v58  ;;  %v3733_v46 = vpack.c.bf16 %v1132_v44, %v1131_v43  ;;  %v1124_v58 = vld [vmem:[%s5639_s9 + $0xf8] sm:$0xff]  ;;  %v1163_v43 = vld [vmem:[%s5639_s9 + $0x230] sm:$0xff] }
 0x18d   : > { %v1164_v44 = vld [vmem:[%s5639_s9 + $0x238] sm:$0xff] }
 0x18e   : > { %v3765_v45 = vpack.c.bf16 %v1164_v44, %v1163_v43  ;;  %v1213_v43 = vld [vmem:[%s5639_s9 + $0x3c0] sm:$0xff]  ;;  %v1214_v44 = vld [vmem:[%s5639_s9 + $0x3c8] sm:$0xff] }
 0x241   : > { %v665_v39 = vpop.f32.mrb[0].mxu1 }
 0x242   : > { %v666_v40 = vadd.f32 %v665_v39, %v598_v38  ;;  %v3432_v41 = vpop.f32.mrb[1].mxu1  ;;  %v1130_v38 = vld [vmem:[%s5639_s9 + $0x128] sm:$0xff]  ;;  %v1147_v39 = vld [vmem:[%s5639_s9 + $0x1b0] sm:$0xff] }
 0x243   : > { %v3729_v41 = vpack.c.bf16 %v1130_v38, %v1129_v37  ;;  %v1161_v37 = vld [vmem:[%s5639_s9 + $0x220] sm:$0xff]  ;;  %v1162_v38 = vld [vmem:[%s5639_s9 + $0x228] sm:$0xff] }
 0x244   : > { %3466 = vmatmul.mubr.f32.vlgmr.msra.gmra.mrb[2].mxu0 %v666_v40  ;;  %v1148_v40 = vld [vmem:[%s5639_s9 + $0x1b8] sm:$0xff] }
 0x245   : > { %3690 = vmatpush3.bf16.msra.mxu0 %v3689_v51  ;;  %v3731_v42 = vpack.c.bf16 %v1148_v40, %v1147_v39  ;;  %v1121_v51 = vld [vmem:[%s5639_s9 + $0xe0] sm:$0xff]  ;;  %1308 = vmatprep.mubr.f32.mxu0 %v892_v7  ;;  %v3761_v39 = vpack.c.bf16 %v1162_v38, %v1161_v37  ;;  %v1179_v40 = vld [vmem:[%s5639_s9 + $0x2b0] sm:$0xff] }
 0x246   : > { %3692 = vmatprep.subr.bf16.mxu0 %v3691_v52  ;;  %v1122_v52 = vld [vmem:[%s5639_s9 + $0xe8] sm:$0xff]  ;;  %v1221_v7 = vld [vmem:[%s5639_s9 + $0x400] sm:$0xff] }
 0x247   : > { %v3711_v53 = vpack.c.bf16 %v1122_v52, %v1121_v51  ;;  %v1183_v51 = vld [vmem:[%s5639_s9 + $0x2d0] sm:$0xff]  ;;  %v1184_v52 = vld [vmem:[%s5639_s9 + $0x2d8] sm:$0xff] }
 0x249   : > { %3694 = vmatpush3.bf16.msra.mxu0 %v3693_v57  ;;  %v1123_v57 = vld [vmem:[%s5639_s9 + $0xf0] sm:$0xff] }
 0x24a   : > { %3696 = vmatprep.subr.bf16.mxu0 %v3695_v61  ;;  %v3715_v59 = vpack.c.bf16 %v1124_v58, %v1123_v57  ;;  %v1108_v61 = vld [vmem:[%s5639_s9 + $0x78] sm:$0xff]  ;;  %v1185_v57 = vld [vmem:[%s5639_s9 + $0x2e0] sm:$0xff]  ;;  %v1186_v58 = vld [vmem:[%s5639_s9 + $0x2e8] sm:$0xff] }
 0x24b   : > { %v3717_v2 = vpack.c.bf16 %v1108_v61, %v1107_v60  ;;  %v1169_v60 = vld [vmem:[%s5639_s9 + $0x260] sm:$0xff]  ;;  %v1170_v61 = vld [vmem:[%s5639_s9 + $0x268] sm:$0xff] }
 0x24c   : > { %v3777_v62 = vpack.c.bf16 %v1170_v61, %v1169_v60 }
 0x24d   : > { %3698 = vmatpush3.bf16.msra.mxu0 %v3697_v4  ;;  %v1135_v4 = vld [vmem:[%s5639_s9 + $0x150] sm:$0xff] }
 0x24e   : > { %3700 = vmatprep.subr.bf16.mxu0 %v3699_v5  ;;  %v1136_v5 = vld [vmem:[%s5639_s9 + $0x158] sm:$0xff] }
 0x24f   : > { %v3741_v6 = vpack.c.bf16 %v1136_v5, %v1135_v4  ;;  %v1171_v4 = vld [vmem:[%s5639_s9 + $0x270] sm:$0xff]  ;;  %v1172_v5 = vld [vmem:[%s5639_s9 + $0x278] sm:$0xff] }
 0x251   : > { %3702 = vmatpush3.bf16.msra.mxu0 %v3701_v10  ;;  %v3743_v10 = vpack.c.bf16 %v1154_v9, %v1153_v8  ;;  %v1222_v8 = vld [vmem:[%s5639_s9 + $0x408] sm:$0xff] }
 0x252   : > { %3704 = vmatprep.subr.bf16.mxu0 %v3703_v11  ;;  %v1137_v11 = vld [vmem:[%s5639_s9 + $0x160] sm:$0xff]  ;;  %v4803_v9 = vpack.c.bf16 %v1222_v8, %v1221_v7 }
 0x253   : > { %v3745_v13 = vpack.c.bf16 %v1138_v12, %v1137_v11  ;;  %v772_v12 = vld [vmem:[%s5638_s8] sm:$0x1] }
 0x255   : > { %3706 = vmatpush3.bf16.msra.mxu0 %v3705_v16  ;;  %v1155_v16 = vld [vmem:[%s5639_s9 + $0x1f0] sm:$0xff] }
 0x256   : > { %3708 = vmatprep.subr.bf16.mxu0 %v3707_v17  ;;  %v3751_v17 = vpack.c.bf16 %v1174_v15, %v1173_v14 }
 0x259   : > { %3710 = vmatpush3.bf16.msra.mxu0 %v3709_v20  ;;  %v3747_v20 = vpack.c.bf16 %v1156_v18, %v1155_v16  ;;  %v1189_v18 = vld [vmem:[%s5639_s9 + $0x300] sm:$0xff] }
 0x25a   : > { %3712 = vmatprep.subr.bf16.mxu0 %v3711_v53  ;;  %v3771_v53 = vpack.c.bf16 %v1184_v52, %v1183_v51  ;;  %v1216_v51 = vld [vmem:[%s5639_s9 + $0x3d8] sm:$0xff] }
 0x25d   : > { %3714 = vmatpush3.bf16.msra.mxu0 %v3713_v56  ;;  %v3773_v56 = vpack.c.bf16 %v1168_v55, %v1167_v54  ;;  %v1199_v55 = vld [vmem:[%s5639_s9 + $0x350] sm:$0xff] }
 0x25e   : > { %3716 = vmatprep.subr.bf16.mxu0 %v3715_v59  ;;  %v3775_v59 = vpack.c.bf16 %v1186_v58, %v1185_v57  ;;  %v1217_v58 = vld [vmem:[%s5639_s9 + $0x3e0] sm:$0xff] }
 0x261   : > { %3718 = vmatpush3.bf16.msra.mxu0 %v3717_v2  ;;  %v1188_v2 = vld [vmem:[%s5639_s9 + $0x2f8] sm:$0xff] }
 0x262   : > { %3752 = vmatprep.subr.bf16.mxu0 %v3751_v17 }
 0x264   : > { %1309 = vmatmul.mubr.f32.vlgmr.msra.gmra.mrb[4].mxu0 %v4203_v1  ;;  %v1157_v1 = vld [vmem:[%s5639_s9 + $0x200] sm:$0xff] }
 0x265   : > { %v3753_v21 = vpack.c.bf16 %v1158_v19, %v1157_v1  ;;  %v1190_v1 = vld [vmem:[%s5639_s9 + $0x308] sm:$0xff]  ;;  %v1207_v19 = vld [vmem:[%s5639_s9 + $0x390] sm:$0xff] }
 0x267   : > { %3754 = vmatpush3.bf16.msra.mxu0 %v3753_v21  ;;  %v908_v21 = vld [vmem:[#allocation2 + $0x2] sm:$0xff] }
 0x317   : > { %v752_v26 = vpop.f32.mrb[2].mxu0 }
 0x318   : > { %v753_v28 = vadd.f32 %v752_v26, %v685_v23  ;;  %v3467_v29 = vpop.f32.mrb[3].mxu0  ;;  %v1140_v23 = vld [vmem:[%s5639_s9 + $0x178] sm:$0xff] }
 0x319   : > { %v3749_v24 = vpack.c.bf16 %v1140_v23, %v1139_v22  ;;  %v1176_v26 = vld [vmem:[%s5639_s9 + $0x298] sm:$0xff]  ;;  %v3785_v22 = vpack.c.bf16 %v1190_v1, %v1189_v18 }
 0x31a   : > { %3501 = vmatmul.mubr.f32.vlgmr.msra.gmra.mrb[2].mxu1 %v753_v28  ;;  %v1159_v28 = vld [vmem:[%s5639_s9 + $0x210] sm:$0xff]  ;;  %v1160_v29 = vld [vmem:[%s5639_s9 + $0x218] sm:$0xff] }
 0x31b   : > { %3722 = vmatpush3.bf16.msra.mxu1 %v3721_v27  ;;  %v3755_v27 = vpack.c.bf16 %v1176_v26, %v1175_v25  ;;  %v3757_v31 = vpack.c.bf16 %v1160_v29, %v1159_v28  ;;  %v1191_v25 = vld [vmem:[%s5639_s9 + $0x310] sm:$0xff]  ;;  %v1192_v26 = vld [vmem:[%s5639_s9 + $0x318] sm:$0xff]  ;;  %v1210_v28 = vld [vmem:[%s5639_s9 + $0x3a8] sm:$0xff] }
 0x31c   : > { %3724 = vmatprep.subr.bf16.mxu1 %v3723_v30  ;;  %v1205_v30 = vld [vmem:[%s5639_s9 + $0x380] sm:$0xff] }
 0x31d   : > { %3756 = vmatprep.subr.bf16.mxu0 %v3755_v27  ;;  %v3783_v33 = vpack.c.bf16 %v1206_v32, %v1205_v30  ;;  %v1209_v27 = vld [vmem:[%s5639_s9 + $0x3a0] sm:$0xff]  ;;  %v3789_v30 = vpack.c.bf16 %v1192_v26, %v1191_v25  ;;  %v1230_v25 = vld [vmem:[%s5639_s9 + $0x448] sm:$0xff] }
 0x31e   : > { %3758 = vmatpush3.bf16.msra.mxu0 %v3757_v31  ;;  %v3791_v31 = vpack.c.bf16 %v1210_v28, %v1209_v27  ;;  %v1193_v32 = vld [vmem:[%s5639_s9 + $0x320] sm:$0xff]  ;;  %v1231_v27 = vld [vmem:[%s5639_s9 + $0x450] sm:$0xff]  ;;  %v1232_v28 = vld [vmem:[%s5639_s9 + $0x458] sm:$0xff] }
 0x31f   : > { %3726 = vmatpush3.bf16.msra.mxu1 %v3725_v35  ;;  %v1178_v35 = vld [vmem:[%s5639_s9 + $0x2a8] sm:$0xff] }
 0x320   : > { %3728 = vmatprep.subr.bf16.mxu1 %v3727_v36  ;;  %v3759_v36 = vpack.c.bf16 %v1178_v35, %v1177_v34  ;;  %v1211_v35 = vld [vmem:[%s5639_s9 + $0x3b0] sm:$0xff] }
 0x322   : > { %3760 = vmatprep.subr.bf16.mxu0 %v3759_v36  ;;  %v1212_v36 = vld [vmem:[%s5639_s9 + $0x3b8] sm:$0xff] }
 0x323   : > { %3730 = vmatpush3.bf16.msra.mxu1 %v3729_v41  ;;  %3762 = vmatpush3.bf16.msra.mxu0 %v3761_v39  ;;  %v1180_v41 = vld [vmem:[%s5639_s9 + $0x2b8] sm:$0xff]  ;;  %v3795_v39 = vpack.c.bf16 %v1212_v36, %v1211_v35 }
 0x324   : > { %3732 = vmatprep.subr.bf16.mxu1 %v3731_v42  ;;  %v3763_v42 = vpack.c.bf16 %v1180_v41, %v1179_v40  ;;  %v1195_v40 = vld [vmem:[%s5639_s9 + $0x330] sm:$0xff]  ;;  %v1196_v41 = vld [vmem:[%s5639_s9 + $0x338] sm:$0xff] }
 0x326   : > { %3764 = vmatprep.subr.bf16.mxu0 %v3763_v42 }
 0x327   : > { %3734 = vmatpush3.bf16.msra.mxu1 %v3733_v46  ;;  %3766 = vmatpush3.bf16.msra.mxu0 %v3765_v45  ;;  %v1182_v46 = vld [vmem:[%s5639_s9 + $0x2c8] sm:$0xff] }
 0x328   : > { %3736 = vmatprep.subr.bf16.mxu1 %v3735_v47  ;;  %v3767_v47 = vpack.c.bf16 %v1182_v46, %v1181_v0  ;;  %v3797_v0 = vpack.c.bf16 %v1196_v41, %v1195_v40  ;;  %v3799_v46 = vpack.c.bf16 %v1214_v44, %v1213_v43  ;;  %v2018_v43 = vld [vmem:[%s5641_s11 + $0x88] sm:$0xff] }
 0x32a   : > { %3768 = vmatprep.subr.bf16.mxu0 %v3767_v47  ;;  %v1197_v47 = vld [vmem:[%s5639_s9 + $0x340] sm:$0xff] }
 0x32b   : > { %3738 = vmatpush3.bf16.msra.mxu1 %v3737_v50  ;;  %v3769_v50 = vpack.c.bf16 %v1166_v49, %v1165_v48  ;;  %v1198_v48 = vld [vmem:[%s5639_s9 + $0x348] sm:$0xff] }
 0x32c   : > { %3740 = vmatprep.subr.bf16.mxu1 %v3739_v3  ;;  %v3779_v3 = vpack.c.bf16 %v1188_v2, %v1187_v63  ;;  %v1201_v63 = vld [vmem:[%s5639_s9 + $0x360] sm:$0xff]  ;;  %v1202_v2 = vld [vmem:[%s5639_s9 + $0x368] sm:$0xff] }
 0x32d   : > { %3770 = vmatpush3.bf16.msra.mxu0 %v3769_v50  ;;  %v1215_v50 = vld [vmem:[%s5639_s9 + $0x3d0] sm:$0xff]  ;;  %v3809_v7 = vpack.c.bf16 %v1202_v2, %v1201_v63 }
 0x32e   : > { %3772 = vmatprep.subr.bf16.mxu0 %v3771_v53  ;;  %v3801_v53 = vpack.c.bf16 %v1198_v48, %v1197_v47  ;;  %v3803_v54 = vpack.c.bf16 %v1216_v51, %v1215_v50  ;;  %v2019_v47 = vld [vmem:[%s5641_s11 + $0x90] sm:$0xff]  ;;  %v2020_v48 = vld [vmem:[%s5641_s11 + $0x98] sm:$0xff] }
 0x32f   : > { %3742 = vmatpush3.bf16.msra.mxu1 %v3741_v6  ;;  %v3781_v6 = vpack.c.bf16 %v1172_v5, %v1171_v4  ;;  %v1219_v4 = vld [vmem:[%s5639_s9 + $0x3f0] sm:$0xff]  ;;  %v1220_v5 = vld [vmem:[%s5639_s9 + $0x3f8] sm:$0xff] }
 0x330   : > { %3744 = vmatprep.subr.bf16.mxu1 %v3743_v10  ;;  %v863_v10 = vlaneseq  ;;  %v3811_v8 = vpack.c.bf16 %v1220_v5, %v1219_v4  ;;  %v2003_v50 = vld [vmem:[%s5641_s11 + $0x10] sm:$0xff]  ;;  %v2004_v51 = vld [vmem:[%s5641_s11 + $0x18] sm:$0xff] }
 0x331   : > { %3774 = vmatpush3.bf16.msra.mxu0 %v3773_v56  ;;  %v1200_v56 = vld [vmem:[%s5639_s9 + $0x358] sm:$0xff]  ;;  %v2051_v5 = vld [vmem:[%s5641_s11 + $0x190] sm:$0xff] }
 0x332   : > { %3776 = vmatprep.subr.bf16.mxu0 %v3775_v59  ;;  %v864_v11 = vshrl.u32 %v863_v10, 7  ;;  %v1218_v59 = vld [vmem:[%s5639_s9 + $0x3e8] sm:$0xff]  ;;  %v3805_v61 = vpack.c.bf16 %v1200_v56, %v1199_v55  ;;  %v1203_v10 = vld [vmem:[%s5639_s9 + $0x370] sm:$0xff]  ;;  %v2049_v55 = vld [vmem:[%s5641_s11 + $0x180] sm:$0xff] }
 0x333   : > { %3746 = vmatpush3.bf16.msra.mxu1 %v3745_v13  ;;  %v2050_v56 = vld [vmem:[%s5641_s11 + $0x188] sm:$0xff]  ;;  %v2024_v4 = vld [vmem:[%s5641_s11 + $0xb8] sm:$0xff] }
 0x334   : > { %3748 = vmatprep.subr.bf16.mxu1 %v3747_v20  ;;  %v865_v13 = vsub.s32 0, %v864_v11  ;;  %v1208_v20 = vld [vmem:[%s5639_s9 + $0x398] sm:$0xff] }
 0x335   : > { %3778 = vmatpush3.bf16.msra.mxu0 %v3777_v62  ;;  %v3807_v62 = vpack.c.bf16 %v1218_v59, %v1217_v58  ;;  %v1204_v11 = vld [vmem:[%s5639_s9 + $0x378] sm:$0xff]  ;;  %v2005_v58 = vld [vmem:[%s5641_s11 + $0x20] sm:$0xff]  ;;  %v3879_v59 = vpack.c.bf16 %v2050_v56, %v2049_v55  ;;  %v2059_v56 = vld [vmem:[%s5641_s11 + $0x1d0] sm:$0xff] }
 0x336   : > { %3780 = vmatprep.subr.bf16.mxu0 %v3779_v3  ;;  %v2016_v55 = vld [vmem:[%s5641_s11 + $0x78] sm:$0xff] }
 0x337   : > { %3750 = vmatpush3.bf16.msra.mxu1 %v3749_v24  ;;  %v3787_v24 = vpack.c.bf16 %v1208_v20, %v1207_v19  ;;  %v1225_v19 = vld [vmem:[%s5639_s9 + $0x420] sm:$0xff]  ;;  %v1226_v20 = vld [vmem:[%s5639_s9 + $0x428] sm:$0xff] }
 0x338   : > { %3784 = vmatprep.subr.bf16.mxu1 %v3783_v33  ;;  %v1194_v33 = vld [vmem:[%s5639_s9 + $0x328] sm:$0xff] }
 0x339   : > { %3782 = vmatpush3.bf16.msra.mxu0 %v3781_v6  ;;  %v3793_v38 = vpack.c.bf16 %v1194_v33, %v1193_v32  ;;  %v1235_v33 = vld [vmem:[%s5639_s9 + $0x470] sm:$0xff] }
 0x33a   : > { %3816 = vmatprep.subr.bf16.mxu0 %v4803_v9 }
 0x3ed   : > { %v839_v14 = vpop.f32.mrb[2].mxu1 }
 0x3ee   : > { %v840_v15 = vadd.f32 %v839_v14, %v772_v12  ;;  %v3502_v16 = vpop.f32.mrb[3].mxu1  ;;  %v1224_v14 = vld [vmem:[%s5639_s9 + $0x418] sm:$0xff] }
 0x3ef   : > { %v3813_v16 = vpack.c.bf16 %v1204_v11, %v1203_v10  ;;  %v2035_v11 = vld [vmem:[%s5641_s11 + $0x110] sm:$0xff] }
 0x3f0   : > { %v4809_v17 = vrot.slane %v840_v15, %v865_v13  ;;  %v1223_v13 = vld [vmem:[%s5639_s9 + $0x410] sm:$0xff] }
 0x3f1   : > { %v3819_v18 = vpack.c.bf16 %v1224_v14, %v1223_v13  ;;  %v2008_v13 = vld [vmem:[%s5641_s11 + $0x38] sm:$0xff] }
 0x3f2   : > { %868 = vst [vmem:[#allocation2 + $0x11] sm:$0xff] %v4809_v17  ;;  %869 = vst [vmem:[#allocation2 + $0x21] sm:$0xff] %v4809_v17  ;;  %1313 = vmatprep.mubr.f32.mxu0 %v4809_v17 }
 0x3f3   : > { %870 = vst [vmem:[#allocation2 + $0x31] sm:$0xff] %v4809_v17  ;;  %871 = vst [vmem:[#allocation2 + $0x41] sm:$0xff] %v4809_v17 }
 0x3f4   : > { %872 = vst [vmem:[#allocation2 + $0x51] sm:$0xff] %v4809_v17  ;;  %873 = vst [vmem:[#allocation2 + $0x61] sm:$0xff] %v4809_v17 }
 0x3f5   : > { %874 = vst [vmem:[#allocation2 + $0x71] sm:$0xff] %v4809_v17  ;;  %875 = vst [vmem:[#allocation2 + $0x81] sm:$0xff] %v4809_v17 }
 0x3f9   : > { %v924_v23 = vld [vmem:[#allocation2 + $0x10] sm:$0xff]  ;;  %v4845_v29 = vld [vmem:[#allocation2 + $0x20] sm:$0xff] }
 0x3fa   : > { %1413 = vmatprep.mubr.f32.mxu1 %v924_v23  ;;  %1314 = vmatmul.mubr.f32.gmra.mrb[6].mxu0 %v924_v23  ;;  %v4855_v34 = vld [vmem:[#allocation2 + $0x12] sm:$0xff]  ;;  %v4875_v42 = vld [vmem:[#allocation2 + $0x22] sm:$0xff] }
 0x3fb   : > { %1414 = vmatmul.mubr.f32.vlgmr.msra.gmra.mrb[4].mxu1 %v908_v21  ;;  %1318 = vmatprep.mubr.f32.mxu0 %v4809_v17  ;;  %v4865_v37 = vld [vmem:[#allocation2 + $0x30] sm:$0xff]  ;;  %v4885_v45 = vld [vmem:[#allocation2 + $0x40] sm:$0xff]  ;;  %v3823_v21 = vpack.c.bf16 %v1226_v20, %v1225_v19  ;;  %v1228_v23 = vld [vmem:[%s5639_s9 + $0x438] sm:$0xff] }
 0x3fc   : > { %1418 = vmatprep.mubr.f32.mxu1 %v4845_v29  ;;  %3786 = vmatpush3.bf16.msra.mxu1 %v3785_v22  ;;  %v4895_v49 = vld [vmem:[#allocation2 + $0x32] sm:$0xff]  ;;  %v4915_v57 = vld [vmem:[#allocation2 + $0x42] sm:$0xff] }
 0x3fd   : > { %3788 = vmatprep.subr.bf16.mxu1 %v3787_v24  ;;  %v4905_v52 = vld [vmem:[#allocation2 + $0x50] sm:$0xff]  ;;  %v4925_v60 = vld [vmem:[#allocation2 + $0x60] sm:$0xff]  ;;  %v2054_v19 = vld [vmem:[%s5641_s11 + $0x1a8] sm:$0xff] }
 0x3fe   : > { %1319 = vmatmul.mubr.f32.gmra.mrb[8].mxu0 %v4845_v29  ;;  %v4935_v3 = vld [vmem:[#allocation2 + $0x52] sm:$0xff]  ;;  %v4955_v12 = vld [vmem:[#allocation2 + $0x62] sm:$0xff] }
 0x3ff   : > { %1419 = vmatmul.mubr.f32.gmra.mrb[6].mxu1 %v4855_v34  ;;  %1323 = vmatprep.mubr.f32.mxu0 %v4809_v17  ;;  %v4945_v6 = vld [vmem:[#allocation2 + $0x70] sm:$0xff]  ;;  %v4964_v15 = vld [vmem:[#allocation2 + $0x80] sm:$0xff] }
 0x400   : > { %1423 = vmatprep.mubr.f32.mxu1 %v4865_v37  ;;  %3790 = vmatpush3.bf16.msra.mxu1 %v3789_v30  ;;  %v4968_v1 = vld [vmem:[#allocation2 + $0x72] sm:$0xff]  ;;  %v1229_v24 = vld [vmem:[%s5639_s9 + $0x440] sm:$0xff] }
 0x401   : > { %3792 = vmatprep.subr.bf16.mxu1 %v3791_v31  ;;  %v1227_v22 = vld [vmem:[%s5639_s9 + $0x430] sm:$0xff]  ;;  %v3831_v26 = vpack.c.bf16 %v1230_v25, %v1229_v24  ;;  %v1233_v30 = vld [vmem:[%s5639_s9 + $0x460] sm:$0xff]  ;;  %v1234_v31 = vld [vmem:[%s5639_s9 + $0x468] sm:$0xff] }
 0x402   : > { %1324 = vmatmul.mubr.f32.gmra.mrb[10].mxu0 %v4865_v37  ;;  %v3839_v32 = vpack.c.bf16 %v1234_v31, %v1233_v30  ;;  %v963_v36 = vld [vmem:[#allocation2 + $0x82] sm:$0xff]  ;;  %v2056_v30 = vld [vmem:[%s5641_s11 + $0x1b8] sm:$0xff] }
 0x403   : > { %1424 = vmatmul.mubr.f32.gmra.mrb[8].mxu1 %v4875_v42  ;;  %1328 = vmatprep.mubr.f32.mxu0 %v4809_v17  ;;  %v2010_v24 = vld [vmem:[%s5641_s11 + $0x48] sm:$0xff] }
 0x404   : > { %1428 = vmatprep.mubr.f32.mxu1 %v4885_v45  ;;  %3794 = vmatpush3.bf16.msra.mxu1 %v3793_v38  ;;  %v5038_v38 = vld [vmem:[#allocation2] sm:$0xff] }
 0x405   : > { %3796 = vmatprep.subr.bf16.mxu1 %v3795_v39  ;;  %v2899_v39 = vpop.f32.mrb[4].mxu0 }
 0x406   : > { %1329 = vmatmul.mubr.f32.gmra.mrb[12].mxu0 %v4885_v45  ;;  %v2900_v40 = vpop.f32.mrb[5].mxu0 }
 0x407   : > { %1429 = vmatmul.mubr.f32.gmra.mrb[10].mxu1 %v4895_v49  ;;  %1333 = vmatprep.mubr.f32.mxu0 %v4809_v17  ;;  %v5045_v41 = vadd.f32 %v2900_v40, %v2899_v39  ;;  %v2029_v39 = vld [vmem:[%s5641_s11 + $0xe0] sm:$0xff]  ;;  %v2030_v40 = vld [vmem:[%s5641_s11 + $0xe8] sm:$0xff] }
 0x408   : > { %1433 = vmatprep.mubr.f32.mxu1 %v4905_v52  ;;  %3798 = vmatpush3.bf16.msra.mxu1 %v3797_v0  ;;  %v2002_v0 = vld [vmem:[%s5641_s11 + $0x8] sm:$0xff] }
 0x409   : > { %3800 = vmatprep.subr.bf16.mxu1 %v3799_v46 }
 0x40a   : > { %1334 = vmatmul.mubr.f32.gmra.mrb[14].mxu0 %v4905_v52 }
 0x40b   : > { %1434 = vmatmul.mubr.f32.gmra.mrb[12].mxu1 %v4915_v57  ;;  %1338 = vmatprep.mubr.f32.mxu0 %v4809_v17 }
 0x40c   : > { %1438 = vmatprep.mubr.f32.mxu1 %v4925_v60  ;;  %3802 = vmatpush3.bf16.msra.mxu1 %v3801_v53  ;;  %v2021_v53 = vld [vmem:[%s5641_s11 + $0xa0] sm:$0xff] }
 0x40d   : > { %3804 = vmatprep.subr.bf16.mxu1 %v3803_v54  ;;  %v2022_v54 = vld [vmem:[%s5641_s11 + $0xa8] sm:$0xff] }
 0x40e   : > { %1339 = vmatmul.mubr.f32.gmra.mrb[16].mxu0 %v4925_v60 }
 0x40f   : > { %1439 = vmatmul.mubr.f32.gmra.mrb[14].mxu1 %v4935_v3  ;;  %1343 = vmatprep.mubr.f32.mxu0 %v4809_v17 }
 0x410   : > { %1443 = vmatprep.mubr.f32.mxu1 %v4945_v6  ;;  %3806 = vmatpush3.bf16.msra.mxu1 %v3805_v61  ;;  %v2034_v61 = vld [vmem:[%s5641_s11 + $0x108] sm:$0xff] }
 0x411   : > { %3808 = vmatprep.subr.bf16.mxu1 %v3807_v62  ;;  %v2006_v62 = vld [vmem:[%s5641_s11 + $0x28] sm:$0xff] }
 0x412   : > { %1344 = vmatmul.mubr.f32.gmra.mrb[18].mxu0 %v4945_v6  ;;  %v3857_v2 = vpack.c.bf16 %v2006_v62, %v2005_v58 }
 0x413   : > { %1444 = vmatmul.mubr.f32.gmra.mrb[16].mxu1 %v4955_v12  ;;  %1518 = vmatprep.mubr.f32.mxu0 %v4855_v34  ;;  %v1236_v34 = vld [vmem:[%s5639_s9 + $0x478] sm:$0xff] }
 0x414   : > { %1448 = vmatprep.mubr.f32.mxu1 %v4964_v15  ;;  %3810 = vmatpush3.bf16.msra.mxu1 %v3809_v7  ;;  %v3843_v35 = vpack.c.bf16 %v1236_v34, %v1235_v33  ;;  %v2039_v34 = vld [vmem:[%s5641_s11 + $0x130] sm:$0xff] }
 0x415   : > { %3812 = vmatprep.subr.bf16.mxu1 %v3811_v8  ;;  %v2007_v8 = vld [vmem:[%s5641_s11 + $0x30] sm:$0xff] }
 0x416   : > { %1519 = vmatmul.mubr.f32.vlgmr.msra.gmra.mrb[20].mxu0 %v4809_v17 }
 0x417   : > { %1449 = vmatmul.mubr.f32.gmra.mrb[18].mxu1 %v4968_v1  ;;  %3818 = vmatpush3.bf16.msra.mxu0 %v4803_v9  ;;  %v3827_v9 = vpack.c.bf16 %v1228_v23, %v1227_v22  ;;  %v2037_v23 = vld [vmem:[%s5641_s11 + $0x120] sm:$0xff] }
 0x418   : > { %1523 = vmatprep.mubr.f32.mxu0 %v4875_v42  ;;  %3814 = vmatpush3.bf16.msra.mxu1 %v3813_v16  ;;  %v2025_v16 = vld [vmem:[%s5641_s11 + $0xc0] sm:$0xff] }
 0x419   : > { %1623 = vmatprep.mubr.f32.mxu1 %v4809_v17  ;;  %3820 = vmatprep.subr.bf16.mxu0 %v3819_v18 }
 0x41a   : > { %1524 = vmatmul.mubr.f32.gmra.mrb[22].mxu0 %v4809_v17 }
 0x41b   : > { %1624 = vmatmul.mubr.f32.vlgmr.msra.gmra.mrb[20].mxu1 %v4845_v29  ;;  %3822 = vmatpush3.bf16.msra.mxu0 %v3819_v18  ;;  %v3835_v29 = vpack.c.bf16 %v1232_v28, %v1231_v27  ;;  %v2026_v18 = vld [vmem:[%s5641_s11 + $0xc8] sm:$0xff]  ;;  %v2027_v27 = vld [vmem:[%s5641_s11 + $0xd0] sm:$0xff]  ;;  %v2028_v28 = vld [vmem:[%s5641_s11 + $0xd8] sm:$0xff] }
 0x41c   : > { %1528 = vmatprep.mubr.f32.mxu0 %v4895_v49  ;;  %1628 = vmatprep.mubr.f32.mxu1 %v4809_v17  ;;  %v3863_v20 = vpack.c.bf16 %v2026_v18, %v2025_v16  ;;  %v3867_v31 = vpack.c.bf16 %v2028_v28, %v2027_v27  ;;  %v2047_v16 = vld [vmem:[%s5641_s11 + $0x170] sm:$0xff]  ;;  %v2048_v18 = vld [vmem:[%s5641_s11 + $0x178] sm:$0xff]  ;;  %v2085_v28 = vld [vmem:[%s5641_s11 + $0x2a0] sm:$0xff] }
 0x41d   : > { %3824 = vmatprep.subr.bf16.mxu0 %v3823_v21 }
 0x41e   : > { %1529 = vmatmul.mubr.f32.gmra.mrb[24].mxu0 %v4809_v17 }
 0x41f   : > { %1629 = vmatmul.mubr.f32.gmra.mrb[22].mxu1 %v4865_v37  ;;  %3826 = vmatpush3.bf16.msra.mxu0 %v3823_v21  ;;  %v996_v37 = vld [vmem:[#allocation2 + $0x91] sm:$0xff]  ;;  %v2009_v21 = vld [vmem:[%s5641_s11 + $0x40] sm:$0xff] }
 0x420   : > { %1533 = vmatprep.mubr.f32.mxu0 %v4915_v57  ;;  %1633 = vmatprep.mubr.f32.mxu1 %v4809_v17 }
 0x421   : > { %3828 = vmatprep.subr.bf16.mxu0 %v3827_v9 }
 0x422   : > { %1534 = vmatmul.mubr.f32.gmra.mrb[26].mxu0 %v4809_v17 }
 0x423   : > { %1634 = vmatmul.mubr.f32.gmra.mrb[24].mxu1 %v4885_v45  ;;  %3830 = vmatpush3.bf16.msra.mxu0 %v3827_v9  ;;  %v2001_v45 = vld [vmem:[%s5641_s11] sm:$0xff]  ;;  %v2038_v9 = vld [vmem:[%s5641_s11 + $0x128] sm:$0xff] }
 0x424   : > { %1538 = vmatprep.mubr.f32.mxu0 %v4935_v3  ;;  %1638 = vmatprep.mubr.f32.mxu1 %v4809_v17  ;;  %v3849_v46 = vpack.c.bf16 %v2002_v0, %v2001_v45  ;;  %v3889_v25 = vpack.c.bf16 %v2038_v9, %v2037_v23  ;;  %v2013_v45 = vld [vmem:[%s5641_s11 + $0x60] sm:$0xff]  ;;  %v2067_v23 = vld [vmem:[%s5641_s11 + $0x210] sm:$0xff]  ;;  %v2068_v9 = vld [vmem:[%s5641_s11 + $0x218] sm:$0xff] }
 0x425   : > { %3832 = vmatprep.subr.bf16.mxu0 %v3831_v26 }
 0x426   : > { %1539 = vmatmul.mubr.f32.gmra.mrb[28].mxu0 %v4809_v17 }
 0x427   : > { %1639 = vmatmul.mubr.f32.gmra.mrb[26].mxu1 %v4905_v52  ;;  %3834 = vmatpush3.bf16.msra.mxu0 %v3831_v26  ;;  %v3853_v52 = vpack.c.bf16 %v2004_v51, %v2003_v50  ;;  %v3865_v26 = vpack.c.bf16 %v2010_v24, %v2009_v21  ;;  %v2031_v51 = vld [vmem:[%s5641_s11 + $0xf0] sm:$0xff]  ;;  %v2084_v21 = vld [vmem:[%s5641_s11 + $0x298] sm:$0xff]  ;;  %v2113_v24 = vld [vmem:[%s5641_s11 + $0x380] sm:$0xff] }
 0x428   : > { %1543 = vmatprep.mubr.f32.mxu0 %v4955_v12  ;;  %1643 = vmatprep.mubr.f32.mxu1 %v4809_v17 }
 0x429   : > { %3836 = vmatprep.subr.bf16.mxu0 %v3835_v29 }
 0x42a   : > { %1544 = vmatmul.mubr.f32.gmra.mrb[30].mxu0 %v4809_v17 }
 0x42b   : > { %1644 = vmatmul.mubr.f32.gmra.mrb[28].mxu1 %v4925_v60  ;;  %3838 = vmatpush3.bf16.msra.mxu0 %v3835_v29  ;;  %v2033_v60 = vld [vmem:[%s5641_s11 + $0x100] sm:$0xff]  ;;  %v2055_v29 = vld [vmem:[%s5641_s11 + $0x1b0] sm:$0xff] }
 0x42c   : > { %1548 = vmatprep.mubr.f32.mxu0 %v4968_v1  ;;  %1648 = vmatprep.mubr.f32.mxu1 %v4809_v17  ;;  %v3881_v63 = vpack.c.bf16 %v2034_v61, %v2033_v60  ;;  %v3891_v33 = vpack.c.bf16 %v2056_v30, %v2055_v29  ;;  %v2043_v60 = vld [vmem:[%s5641_s11 + $0x150] sm:$0xff]  ;;  %v2044_v61 = vld [vmem:[%s5641_s11 + $0x158] sm:$0xff]  ;;  %v2086_v29 = vld [vmem:[%s5641_s11 + $0x2a8] sm:$0xff] }
 0x42d   : > { %3840 = vmatprep.subr.bf16.mxu0 %v3839_v32  ;;  %v3901_v62 = vpack.c.bf16 %v2044_v61, %v2043_v60  ;;  %v3919_v30 = vpack.c.bf16 %v2086_v29, %v2085_v28  ;;  %v2079_v61 = vld [vmem:[%s5641_s11 + $0x270] sm:$0xff] }
 0x42e   : > { %1549 = vmatmul.mubr.f32.gmra.mrb[32].mxu0 %v4809_v17 }
 0x42f   : > { %1649 = vmatmul.mubr.f32.gmra.mrb[30].mxu1 %v4945_v6  ;;  %3842 = vmatpush3.bf16.msra.mxu0 %v3839_v32  ;;  %v2052_v6 = vld [vmem:[%s5641_s11 + $0x198] sm:$0xff]  ;;  %v2011_v32 = vld [vmem:[%s5641_s11 + $0x50] sm:$0xff] }
 0x430   : > { %1553 = vmatprep.mubr.f32.mxu0 %v963_v36  ;;  %1653 = vmatprep.mubr.f32.mxu1 %v4809_v17  ;;  %v3883_v10 = vpack.c.bf16 %v2052_v6, %v2051_v5  ;;  %v2045_v5 = vld [vmem:[%s5641_s11 + $0x160] sm:$0xff]  ;;  %v2046_v6 = vld [vmem:[%s5641_s11 + $0x168] sm:$0xff] }
 0x431   : > { %3844 = vmatprep.subr.bf16.mxu0 %v3843_v35 }
 0x432   : > { %1554 = vmatmul.mubr.f32.gmra.mrb[34].mxu0 %v4809_v17  ;;  %v1012_v17 = vld [vmem:[#allocation2 + $0x92] sm:$0xff] }
 0x433   : > { %1654 = vmatmul.mubr.f32.gmra.mrb[32].mxu1 %v4964_v15  ;;  %3846 = vmatpush3.bf16.msra.mxu0 %v3843_v35  ;;  %v3861_v15 = vpack.c.bf16 %v2008_v13, %v2007_v8  ;;  %v2040_v35 = vld [vmem:[%s5641_s11 + $0x138] sm:$0xff]  ;;  %v2081_v8 = vld [vmem:[%s5641_s11 + $0x280] sm:$0xff] }
 0x434   : > { %3535 = vmatprep.mubr.f32.mxu0 %v4875_v42  ;;  %1658 = vmatprep.mubr.f32.mxu1 %v996_v37  ;;  %v2017_v42 = vld [vmem:[%s5641_s11 + $0x80] sm:$0xff]  ;;  %v3893_v37 = vpack.c.bf16 %v2040_v35, %v2039_v34  ;;  %v2064_v13 = vld [vmem:[%s5641_s11 + $0x1f8] sm:$0xff]  ;;  %v2087_v34 = vld [vmem:[%s5641_s11 + $0x2b0] sm:$0xff] }
 0x435   : > { %v3847_v44 = vpack.c.bf16 %v2018_v43, %v2017_v42  ;;  %3880 = vmatprep.subr.bf16.mxu0 %v3879_v59  ;;  %v2057_v42 = vld [vmem:[%s5641_s11 + $0x1c0] sm:$0xff]  ;;  %v2058_v43 = vld [vmem:[%s5641_s11 + $0x1c8] sm:$0xff]  ;;  %v2088_v35 = vld [vmem:[%s5641_s11 + $0x2b8] sm:$0xff] }
 0x436   : > { %3536 = vmatmul.mubr.f32.vlgmr.msra.gmra.mrb[36].mxu0 %v4895_v49  ;;  %v3851_v49 = vpack.c.bf16 %v2020_v48, %v2019_v47  ;;  %v3895_v0 = vpack.c.bf16 %v2058_v43, %v2057_v42  ;;  %v2041_v47 = vld [vmem:[%s5641_s11 + $0x140] sm:$0xff]  ;;  %v2042_v48 = vld [vmem:[%s5641_s11 + $0x148] sm:$0xff] }
 0x437   : > { %1659 = vmatmul.mubr.f32.gmra.mrb[34].mxu1 %v5038_v38  ;;  %3538 = vmatprep.mubr.f32.mxu0 %v4915_v57  ;;  %v3855_v57 = vpack.c.bf16 %v2022_v54, %v2021_v53  ;;  %v3897_v50 = vpack.c.bf16 %v2042_v48, %v2041_v47  ;;  %v2015_v54 = vld [vmem:[%s5641_s11 + $0x70] sm:$0xff]  ;;  %v2090_v42 = vld [vmem:[%s5641_s11 + $0x2c8] sm:$0xff]  ;;  %v2092_v47 = vld [vmem:[%s5641_s11 + $0x2d8] sm:$0xff] }
 0x438   : > { %3848 = vmatprep.subr.bf16.mxu1 %v3847_v44  ;;  %3882 = vmatpush3.bf16.msra.mxu0 %v3881_v63  ;;  %v3871_v44 = vpack.c.bf16 %v2030_v40, %v2029_v39  ;;  %v3877_v58 = vpack.c.bf16 %v2016_v55, %v2015_v54  ;;  %v1801_v63 = vld [vmem:[#allocation2 + $0x1] sm:$0xff] }
 0x439   : > { %3850 = vmatpush3.bf16.msra.mxu1 %v3849_v46  ;;  %3884 = vmatprep.subr.bf16.mxu0 %v3883_v10  ;;  %v2014_v46 = vld [vmem:[%s5641_s11 + $0x68] sm:$0xff]  ;;  %v2089_v40 = vld [vmem:[%s5641_s11 + $0x2c0] sm:$0xff] }
 0x43a   : > { %3539 = vmatmul.mubr.f32.gmra.mrb[38].mxu0 %v4935_v3  ;;  %3852 = vmatprep.subr.bf16.mxu1 %v3851_v49  ;;  %v2023_v3 = vld [vmem:[%s5641_s11 + $0xb0] sm:$0xff]  ;;  %v3873_v49 = vpack.c.bf16 %v2014_v46, %v2013_v45  ;;  %v2082_v10 = vld [vmem:[%s5641_s11 + $0x288] sm:$0xff]  ;;  %v3927_v43 = vpack.c.bf16 %v2090_v42, %v2089_v40  ;;  %v2077_v55 = vld [vmem:[%s5641_s11 + $0x260] sm:$0xff] }
 0x43b   : > { %3541 = vmatprep.mubr.f32.mxu0 %v4955_v12  ;;  %v3859_v7 = vpack.c.bf16 %v2024_v4, %v2023_v3  ;;  %v2036_v12 = vld [vmem:[%s5641_s11 + $0x118] sm:$0xff]  ;;  %v2062_v3 = vld [vmem:[%s5641_s11 + $0x1e8] sm:$0xff]  ;;  %2216 = vmatprep.mubr.f32.mxu1 %v1801_v63  ;;  %v2091_v46 = vld [vmem:[%s5641_s11 + $0x2d0] sm:$0xff] }
 0x43c   : > { %v3885_v14 = vpack.c.bf16 %v2036_v12, %v2035_v11  ;;  %v3911_v11 = vpack.c.bf16 %v2082_v10, %v2081_v8  ;;  %v2063_v12 = vld [vmem:[%s5641_s11 + $0x1f0] sm:$0xff]  ;;  %v2074_v45 = vld [vmem:[%s5641_s11 + $0x248] sm:$0xff]  ;;  %v3931_v48 = vpack.c.bf16 %v2092_v47, %v2091_v46 }
 0x43d   : > { %3854 = vmatpush3.bf16.msra.mxu1 %v3853_v52  ;;  %v2032_v52 = vld [vmem:[%s5641_s11 + $0xf8] sm:$0xff] }
 0x43e   : > { %3542 = vmatmul.mubr.f32.gmra.mrb[40].mxu0 %v4968_v1  ;;  %3856 = vmatprep.subr.bf16.mxu1 %v3855_v57  ;;  %v2053_v1 = vld [vmem:[%s5641_s11 + $0x1a0] sm:$0xff]  ;;  %v3875_v53 = vpack.c.bf16 %v2032_v52, %v2031_v51  ;;  %v2060_v57 = vld [vmem:[%s5641_s11 + $0x1d8] sm:$0xff] }
 0x43f   : > { %3544 = vmatprep.mubr.f32.mxu0 %v963_v36  ;;  %3886 = vmatpush3.bf16.msra.mxu0 %v3885_v14  ;;  %v3887_v22 = vpack.c.bf16 %v2054_v19, %v2053_v1  ;;  %v2012_v36 = vld [vmem:[%s5641_s11 + $0x58] sm:$0xff]  ;;  %v3899_v59 = vpack.c.bf16 %v2060_v57, %v2059_v56  ;;  %v3907_v14 = vpack.c.bf16 %v2064_v13, %v2063_v12  ;;  %v2093_v52 = vld [vmem:[%s5641_s11 + $0x2e0] sm:$0xff]  ;;  %v2078_v56 = vld [vmem:[%s5641_s11 + $0x268] sm:$0xff] }
 0x440   : > { %v3909_v19 = vpack.c.bf16 %v2048_v18, %v2047_v16  ;;  %v3937_v57 = vpack.c.bf16 %v2078_v56, %v2077_v55 }
 0x441   : > { %3858 = vmatpush3.bf16.msra.mxu1 %v3857_v2  ;;  %3888 = vmatprep.subr.bf16.mxu0 %v3887_v22  ;;  %v2061_v2 = vld [vmem:[%s5641_s11 + $0x1e0] sm:$0xff] }
 0x442   : > { %3545 = vmatmul.mubr.f32.gmra.mrb[42].mxu0 %v1012_v17  ;;  %3860 = vmatprep.subr.bf16.mxu1 %v3859_v7  ;;  %v3869_v17 = vpack.c.bf16 %v2012_v36, %v2011_v32  ;;  %v3903_v4 = vpack.c.bf16 %v2062_v3, %v2061_v2  ;;  %v3905_v7 = vpack.c.bf16 %v2046_v6, %v2045_v5  ;;  %v2070_v32 = vld [vmem:[%s5641_s11 + $0x228] sm:$0xff]  ;;  %v2129_v2 = vld [vmem:[%s5641_s11 + $0x400] sm:$0xff] }
 0x443   : > { %3890 = vmatpush3.bf16.msra.mxu0 %v3889_v25  ;;  %v3917_v25 = vpack.c.bf16 %v2068_v9, %v2067_v23  ;;  %v3923_v36 = vpack.c.bf16 %v2088_v35, %v2087_v34  ;;  %v2130_v3 = vld [vmem:[%s5641_s11 + $0x408] sm:$0xff]  ;;  %v2794_v5 = vld [vmem:[%s5640_s10] ss:$0 sm:$0xff] }
 0x444   : > { %3892 = vmatprep.subr.bf16.mxu0 %v3891_v33  ;;  %v1311_v12 = vadd.f32 %v5045_v41, %v2794_v5 }
 0x445   : > { %3862 = vmatpush3.bf16.msra.mxu1 %v3861_v15  ;;  %v2066_v15 = vld [vmem:[%s5641_s11 + $0x208] sm:$0xff] }
 0x446   : > { %3864 = vmatprep.subr.bf16.mxu1 %v3863_v20  ;;  %v2083_v20 = vld [vmem:[%s5641_s11 + $0x290] sm:$0xff] }
 0x447   : > { %3894 = vmatpush3.bf16.msra.mxu0 %v3893_v37  ;;  %v3915_v22 = vpack.c.bf16 %v2084_v21, %v2083_v20  ;;  %v2071_v37 = vld [vmem:[%s5641_s11 + $0x230] sm:$0xff] }
 0x448   : > { %3896 = vmatprep.subr.bf16.mxu0 %v3895_v0 }
 0x449   : > { %3866 = vmatpush3.bf16.msra.mxu1 %v3865_v26  ;;  %v2114_v26 = vld [vmem:[%s5641_s11 + $0x388] sm:$0xff] }
 0x44a   : > { %3868 = vmatprep.subr.bf16.mxu1 %v3867_v31  ;;  %v3943_v27 = vpack.c.bf16 %v2114_v26, %v2113_v24  ;;  %v2069_v31 = vld [vmem:[%s5641_s11 + $0x220] sm:$0xff] }
 0x44b   : > { %3898 = vmatpush3.bf16.msra.mxu0 %v3897_v50  ;;  %v3921_v33 = vpack.c.bf16 %v2070_v32, %v2069_v31  ;;  %v2076_v50 = vld [vmem:[%s5641_s11 + $0x258] sm:$0xff] }
 0x44c   : > { %3900 = vmatprep.subr.bf16.mxu0 %v3899_v59  ;;  %v2096_v59 = vld [vmem:[%s5641_s11 + $0x2f8] sm:$0xff] }
 0x44d   : > { %3870 = vmatpush3.bf16.msra.mxu1 %v3869_v17  ;;  %v2072_v17 = vld [vmem:[%s5641_s11 + $0x238] sm:$0xff] }
 0x44e   : > { %3872 = vmatprep.subr.bf16.mxu1 %v3871_v44  ;;  %v3925_v39 = vpack.c.bf16 %v2072_v17, %v2071_v37  ;;  %v2073_v44 = vld [vmem:[%s5641_s11 + $0x240] sm:$0xff] }
 0x44f   : > { %3902 = vmatpush3.bf16.msra.mxu0 %v3901_v62  ;;  %v3929_v0 = vpack.c.bf16 %v2074_v45, %v2073_v44  ;;  %v2080_v62 = vld [vmem:[%s5641_s11 + $0x278] sm:$0xff] }
 0x450   : > { %3904 = vmatprep.subr.bf16.mxu0 %v3903_v4  ;;  %v3941_v63 = vpack.c.bf16 %v2080_v62, %v2079_v61  ;;  %v5348_v4 = vpack.c.bf16 %v2130_v3, %v2129_v2 }
 0x451   : > { %3874 = vmatpush3.bf16.msra.mxu1 %v3873_v49  ;;  %v2075_v49 = vld [vmem:[%s5641_s11 + $0x250] sm:$0xff] }
 0x452   : > { %3876 = vmatprep.subr.bf16.mxu1 %v3875_v53  ;;  %v3933_v51 = vpack.c.bf16 %v2076_v50, %v2075_v49  ;;  %v2094_v53 = vld [vmem:[%s5641_s11 + $0x2e8] sm:$0xff] }
 0x453   : > { %3906 = vmatpush3.bf16.msra.mxu0 %v3905_v7  ;;  %v3935_v54 = vpack.c.bf16 %v2094_v53, %v2093_v52 }
 0x454   : > { %3908 = vmatprep.subr.bf16.mxu0 %v3907_v14 }
 0x455   : > { %3878 = vmatpush3.bf16.msra.mxu1 %v3877_v58  ;;  %v2095_v58 = vld [vmem:[%s5641_s11 + $0x2f0] sm:$0xff] }
 0x456   : > { %3912 = vmatprep.subr.bf16.mxu1 %v3911_v11  ;;  %v3939_v60 = vpack.c.bf16 %v2096_v59, %v2095_v58 }
 0x457   : > { %3910 = vmatpush3.bf16.msra.mxu0 %v3909_v19 }
 0x458   : > { %2217 = vmatmul.mubr.f32.vlgmr.msra.gmra.mrb[36].mxu1 %v5038_v38  ;;  %v2065_v38 = vld [vmem:[%s5641_s11 + $0x200] sm:$0xff]  ;;  %3944 = vmatprep.subr.bf16.mxu0 %v3943_v27 }
 0x459   : > { %v3913_v1 = vpack.c.bf16 %v2066_v15, %v2065_v38 }
 0x45b   : > { %3914 = vmatpush3.bf16.msra.mxu1 %v3913_v1 }
 0x45c   : > { %3916 = vmatprep.subr.bf16.mxu1 %v3915_v22 }
 0x45f   : > { %3918 = vmatpush3.bf16.msra.mxu1 %v3917_v25 }
 0x460   : > { %3920 = vmatprep.subr.bf16.mxu1 %v3919_v30 }
 0x463   : > { %3922 = vmatpush3.bf16.msra.mxu1 %v3921_v33 }
 0x464   : > { %3924 = vmatprep.subr.bf16.mxu1 %v3923_v36 }
 0x467   : > { %3926 = vmatpush3.bf16.msra.mxu1 %v3925_v39 }
 0x468   : > { %3928 = vmatprep.subr.bf16.mxu1 %v3927_v43 }
 0x46b   : > { %3930 = vmatpush3.bf16.msra.mxu1 %v3929_v0 }
 0x46c   : > { %3932 = vmatprep.subr.bf16.mxu1 %v3931_v48 }
 0x46f   : > { %3934 = vmatpush3.bf16.msra.mxu1 %v3933_v51 }
 0x470   : > { %3936 = vmatprep.subr.bf16.mxu1 %v3935_v54 }
 0x473   : > { %3938 = vmatpush3.bf16.msra.mxu1 %v3937_v57 }
 0x474   : > { %3940 = vmatprep.subr.bf16.mxu1 %v3939_v60 }
 0x477   : > { %3942 = vmatpush3.bf16.msra.mxu1 %v3941_v63 }
 0x478   : > { %3976 = vmatprep.subr.bf16.mxu1 %v5348_v4 }
 0x4cd   : > { %v2902_v6 = vpop.f32.mrb[6].mxu0 }
 0x4ce   : > { %v2955_v7 = vpop.f32.mrb[4].mxu1  ;;  %v2903_v8 = vpop.f32.mrb[7].mxu0 }
 0x4cf   : > { %v2904_v10 = vadd.f32 %v2903_v8, %v2902_v6  ;;  %v2956_v11 = vpop.f32.mrb[5].mxu1 }
 0x4d0   : > { %v2957_v13 = vadd.f32 %v2956_v11, %v2955_v7 }
 0x4d1   : > { %v2905_v38 = vpop.f32.mrb[8].mxu0  ;;  %v1316_v19 = vadd.f32 %v2904_v10, %v2794_v5 }
 0x4d2   : > { %v1416_v14 = vadd.f32 %v2957_v13, %v1311_v12  ;;  %v2958_v15 = vpop.f32.mrb[6].mxu1  ;;  %v2906_v16 = vpop.f32.mrb[9].mxu0 }
 0x4d3   : > { %v2907_v18 = vadd.f32 %v2906_v16, %v2905_v38  ;;  %v2959_v1 = vpop.f32.mrb[7].mxu1 }
 0x4d4   : > { %v2960_v20 = vadd.f32 %v2959_v1, %v2958_v15 }
 0x4d5   : > { %v2908_v21 = vpop.f32.mrb[10].mxu0  ;;  %v1321_v26 = vadd.f32 %v2907_v18, %v2794_v5 }
 0x4d6   : > { %v1421_v22 = vadd.f32 %v2960_v20, %v1316_v19  ;;  %v2961_v23 = vpop.f32.mrb[8].mxu1  ;;  %v2909_v9 = vpop.f32.mrb[11].mxu0 }
 0x4d7   : > { %v2910_v24 = vadd.f32 %v2909_v9, %v2908_v21  ;;  %v2962_v25 = vpop.f32.mrb[9].mxu1 }
 0x4d8   : > { %v2963_v27 = vadd.f32 %v2962_v25, %v2961_v23 }
 0x4d9   : > { %v2911_v28 = vpop.f32.mrb[12].mxu0  ;;  %v1326_v33 = vadd.f32 %v2910_v24, %v2794_v5 }
 0x4da   : > { %v1426_v29 = vadd.f32 %v2963_v27, %v1321_v26  ;;  %v2964_v41 = vpop.f32.mrb[10].mxu1  ;;  %v2912_v30 = vpop.f32.mrb[13].mxu0 }
 0x4db   : > { %v2913_v31 = vadd.f32 %v2912_v30, %v2911_v28  ;;  %v2965_v32 = vpop.f32.mrb[11].mxu1 }
 0x4dc   : > { %v2966_v34 = vadd.f32 %v2965_v32, %v2964_v41 }
 0x4dd   : > { %v2914_v35 = vpop.f32.mrb[14].mxu0  ;;  %v1331_v42 = vadd.f32 %v2913_v31, %v2794_v5 }
 0x4de   : > { %v1431_v36 = vadd.f32 %v2966_v34, %v1326_v33  ;;  %v2967_v37 = vpop.f32.mrb[12].mxu1  ;;  %v2915_v17 = vpop.f32.mrb[15].mxu0 }
 0x4df   : > { %v2916_v39 = vadd.f32 %v2915_v17, %v2914_v35  ;;  %v2968_v40 = vpop.f32.mrb[13].mxu1 }
 0x4e0   : > { %v2969_v43 = vadd.f32 %v2968_v40, %v2967_v37 }
 0x4e1   : > { %v2917_v44 = vpop.f32.mrb[16].mxu0  ;;  %v1336_v49 = vadd.f32 %v2916_v39, %v2794_v5 }
 0x4e2   : > { %v1436_v45 = vadd.f32 %v2969_v43, %v1331_v42  ;;  %v2970_v0 = vpop.f32.mrb[14].mxu1  ;;  %v2918_v46 = vpop.f32.mrb[17].mxu0 }
 0x4e3   : > { %v2919_v47 = vadd.f32 %v2918_v46, %v2917_v44  ;;  %v2971_v48 = vpop.f32.mrb[15].mxu1 }
 0x4e4   : > { %v2972_v50 = vadd.f32 %v2971_v48, %v2970_v0 }
 0x4e5   : > { %v2920_v51 = vpop.f32.mrb[18].mxu0  ;;  %v1341_v57 = vadd.f32 %v2919_v47, %v2794_v5 }
 0x4e6   : > { %v1441_v52 = vadd.f32 %v2972_v50, %v1336_v49  ;;  %v2973_v53 = vpop.f32.mrb[16].mxu1  ;;  %v2921_v54 = vpop.f32.mrb[19].mxu0 }
 0x4e7   : > { %v2922_v55 = vadd.f32 %v2921_v54, %v2920_v51  ;;  %v2974_v56 = vpop.f32.mrb[17].mxu1 }
 0x4e8   : > { %v2975_v58 = vadd.f32 %v2974_v56, %v2973_v53 }
 0x4e9   : > { %v3011_v59 = vpop.f32.mrb[20].mxu0  ;;  %v1346_v3 = vadd.f32 %v2922_v55, %v2794_v5 }
 0x4ea   : > { %v1446_v60 = vadd.f32 %v2975_v58, %v1341_v57  ;;  %v2976_v61 = vpop.f32.mrb[18].mxu1  ;;  %v3012_v62 = vpop.f32.mrb[21].mxu0 }
 0x4eb   : > { %v2977_v63 = vpop.f32.mrb[19].mxu1  ;;  %v3013_v2 = vadd.f32 %v3012_v62, %v3011_v59 }
 0x4ec   : > { %v2978_v6 = vadd.f32 %v2977_v63, %v2976_v61 }
 0x4ed   : > { %v1521_v7 = vadd.f32 %v3013_v2, %v1416_v14  ;;  %v3014_v8 = vpop.f32.mrb[22].mxu0 }
 0x4ee   : > { %v1451_v10 = vadd.f32 %v2978_v6, %v1346_v3  ;;  %v3067_v11 = vpop.f32.mrb[20].mxu1  ;;  %v3015_v12 = vpop.f32.mrb[23].mxu0 }
 0x4ef   : > { %v3016_v13 = vadd.f32 %v3015_v12, %v3014_v8  ;;  %v3068_v38 = vpop.f32.mrb[21].mxu1 }
 0x4f0   : > { %v3069_v15 = vadd.f32 %v3068_v38, %v3067_v11 }
 0x4f1   : > { %v1526_v16 = vadd.f32 %v3016_v13, %v1421_v22  ;;  %v3017_v18 = vpop.f32.mrb[24].mxu0 }
 0x4f2   : > { %v3070_v1 = vpop.f32.mrb[22].mxu1  ;;  %v3018_v19 = vpop.f32.mrb[25].mxu0  ;;  %v1626_v20 = vadd.f32 %v3069_v15, %v1521_v7 }
 0x4f3   : > { %v3019_v21 = vadd.f32 %v3018_v19, %v3017_v18  ;;  %v3071_v23 = vpop.f32.mrb[23].mxu1 }
 0x4f4   : > { %v3072_v9 = vadd.f32 %v3071_v23, %v3070_v1  ;;  %v2097_v23 = vld [vmem:[%s5641_s11 + $0x300] sm:$0xff] }
 0x4f5   : > { %v1531_v24 = vadd.f32 %v3019_v21, %v1426_v29  ;;  %v3020_v25 = vpop.f32.mrb[26].mxu0 }
 0x4f6   : > { %v3073_v5 = vpop.f32.mrb[24].mxu1  ;;  %v3021_v26 = vpop.f32.mrb[27].mxu0  ;;  %v1631_v14 = vadd.f32 %v3072_v9, %v1526_v16  ;;  %v2098_v9 = vld [vmem:[%s5641_s11 + $0x308] sm:$0xff] }
 0x4f7   : > { %v3022_v27 = vadd.f32 %v3021_v26, %v3020_v25  ;;  %v3074_v28 = vpop.f32.mrb[25].mxu1  ;;  %v2115_v25 = vld [vmem:[%s5641_s11 + $0x390] sm:$0xff] }
 0x4f8   : > { %v3075_v41 = vadd.f32 %v3074_v28, %v3073_v5  ;;  %v2116_v5 = vld [vmem:[%s5641_s11 + $0x398] sm:$0xff]  ;;  %v1817_v28 = vld [vmem:[#allocation2 + $0x2] sm:$0xff] }
 0x4f9   : > { %v1536_v30 = vadd.f32 %v3022_v27, %v1431_v36  ;;  %v3023_v31 = vpop.f32.mrb[28].mxu0 }
 0x4fa   : > { %v3076_v32 = vpop.f32.mrb[26].mxu1  ;;  %v3024_v33 = vpop.f32.mrb[29].mxu0  ;;  %v1636_v22 = vadd.f32 %v3075_v41, %v1531_v24  ;;  %v3945_v41 = vpack.c.bf16 %v2098_v9, %v2097_v23  ;;  %v2127_v23 = vld [vmem:[%s5641_s11 + $0x3f0] sm:$0xff]  ;;  %v2128_v9 = vld [vmem:[%s5641_s11 + $0x3f8] sm:$0xff] }
 0x4fb   : > { %v3025_v34 = vadd.f32 %v3024_v33, %v3023_v31  ;;  %v3077_v35 = vpop.f32.mrb[27].mxu1  ;;  %v3947_v33 = vpack.c.bf16 %v2116_v5, %v2115_v25  ;;  %v3971_v5 = vpack.c.bf16 %v2128_v9, %v2127_v23 }
 0x4fc   : > { %v3078_v37 = vadd.f32 %v3077_v35, %v3076_v32 }
 0x4fd   : > { %v1541_v17 = vadd.f32 %v3025_v34, %v1436_v45  ;;  %v3026_v39 = vpop.f32.mrb[30].mxu0  ;;  %v2100_v34 = vld [vmem:[%s5641_s11 + $0x318] sm:$0xff] }
 0x4fe   : > { %v3079_v40 = vpop.f32.mrb[28].mxu1  ;;  %v3027_v42 = vpop.f32.mrb[31].mxu0  ;;  %v1641_v29 = vadd.f32 %v3078_v37, %v1536_v30  ;;  %v2117_v37 = vld [vmem:[%s5641_s11 + $0x3a0] sm:$0xff] }
 0x4ff   : > { %v3028_v43 = vadd.f32 %v3027_v42, %v3026_v39  ;;  %v3080_v44 = vpop.f32.mrb[29].mxu1 }
 0x500   : > { %v3081_v0 = vadd.f32 %v3080_v44, %v3079_v40  ;;  %v2101_v44 = vld [vmem:[%s5641_s11 + $0x320] sm:$0xff] }
 0x501   : > { %v1546_v46 = vadd.f32 %v3028_v43, %v1441_v52  ;;  %v3029_v47 = vpop.f32.mrb[32].mxu0 }
 0x502   : > { %v3082_v48 = vpop.f32.mrb[30].mxu1  ;;  %v3030_v49 = vpop.f32.mrb[33].mxu0  ;;  %v1646_v36 = vadd.f32 %v3081_v0, %v1541_v17  ;;  %v2118_v17 = vld [vmem:[%s5641_s11 + $0x3a8] sm:$0xff] }
 0x503   : > { %v3031_v50 = vadd.f32 %v3030_v49, %v3029_v47  ;;  %v3083_v51 = vpop.f32.mrb[31].mxu1  ;;  %v3951_v43 = vpack.c.bf16 %v2118_v17, %v2117_v37  ;;  %v2102_v0 = vld [vmem:[%s5641_s11 + $0x328] sm:$0xff]  ;;  %v2119_v47 = vld [vmem:[%s5641_s11 + $0x3b0] sm:$0xff] }
 0x504   : > { %v3084_v53 = vadd.f32 %v3083_v51, %v3082_v48  ;;  %v2120_v48 = vld [vmem:[%s5641_s11 + $0x3b8] sm:$0xff]  ;;  %v2103_v51 = vld [vmem:[%s5641_s11 + $0x330] sm:$0xff]  ;;  %v2134_v37 = vld [vmem:[%s5641_s11 + $0x428] sm:$0xff] }
 0x505   : > { %v1551_v54 = vadd.f32 %v3031_v50, %v1446_v60  ;;  %v3032_v55 = vpop.f32.mrb[34].mxu0  ;;  %v3955_v50 = vpack.c.bf16 %v2120_v48, %v2119_v47  ;;  %v2144_v48 = vld [vmem:[%s5641_s11 + $0x478] sm:$0xff] }
 0x506   : > { %v3085_v56 = vpop.f32.mrb[32].mxu1  ;;  %v3033_v57 = vpop.f32.mrb[35].mxu0  ;;  %v1651_v45 = vadd.f32 %v3084_v53, %v1546_v46  ;;  %v2104_v53 = vld [vmem:[%s5641_s11 + $0x338] sm:$0xff] }
 0x507   : > { %v3034_v58 = vadd.f32 %v3033_v57, %v3032_v55  ;;  %v3086_v59 = vpop.f32.mrb[33].mxu1  ;;  %v2121_v55 = vld [vmem:[%s5641_s11 + $0x3c0] sm:$0xff] }
 0x508   : > { %v3087_v61 = vadd.f32 %v3086_v59, %v3085_v56  ;;  %v2122_v56 = vld [vmem:[%s5641_s11 + $0x3c8] sm:$0xff]  ;;  %v2105_v59 = vld [vmem:[%s5641_s11 + $0x340] sm:$0xff] }
 0x509   : > { %v1556_v62 = vadd.f32 %v3034_v58, %v1451_v10  ;;  %v3537_v63 = vpop.f32.mrb[36].mxu0  ;;  %v3959_v58 = vpack.c.bf16 %v2122_v56, %v2121_v55 }
 0x50a   : > { %v3088_v2 = vpop.f32.mrb[34].mxu1  ;;  %v1736_v3 = vadd.f32 %v3537_v63, %v1631_v14  ;;  %v1730_v52 = vpop.f32.mrb[37].mxu0  ;;  %v1656_v6 = vadd.f32 %v3087_v61, %v1551_v54  ;;  %v2106_v61 = vld [vmem:[%s5641_s11 + $0x348] sm:$0xff]  ;;  %v2123_v63 = vld [vmem:[%s5641_s11 + $0x3d0] sm:$0xff] }
 0x50b   : > { %v3089_v7 = vpop.f32.mrb[35].mxu1  ;;  %v1731_v8 = vadd.f32 %v1730_v52, %v1626_v20  ;;  %v3961_v52 = vpack.c.bf16 %v2106_v61, %v2105_v59 }
 0x50c   : > { %v5355_v11 = vmax.f32 %v1736_v3, 0.0  ;;  %v3090_v12 = vadd.f32 %v3089_v7, %v3088_v2  ;;  %v2124_v2 = vld [vmem:[%s5641_s11 + $0x3d8] sm:$0xff]  ;;  %v2107_v7 = vld [vmem:[%s5641_s11 + $0x350] sm:$0xff] }
 0x50d   : > { %v5357_v13 = vmax.f32 %v1731_v8, 0.0  ;;  %v3540_v60 = vpop.f32.mrb[38].mxu0  ;;  %v2108_v8 = vld [vmem:[%s5641_s11 + $0x358] sm:$0xff] }
 0x50e   : > { %1778 = vst [vmem:[#allocation2 + $0x21] sm:$0xff] %v5355_v11  ;;  %v1746_v38 = vadd.f32 %v3540_v60, %v1641_v29  ;;  %v1740_v15 = vpop.f32.mrb[39].mxu0  ;;  %v1661_v16 = vadd.f32 %v3090_v12, %v1556_v62  ;;  %v2125_v60 = vld [vmem:[%s5641_s11 + $0x3e0] sm:$0xff] }
 0x50f   : > { %1777 = vst [vmem:[#allocation2 + $0x11] sm:$0xff] %v5357_v13  ;;  %v1741_v10 = vadd.f32 %v1740_v15, %v1636_v22  ;;  %2221 = vmatprep.mubr.f32.mxu1 %v5357_v13  ;;  %v2099_v22 = vld [vmem:[%s5641_s11 + $0x310] sm:$0xff] }
 0x510   : > { %v5362_v18 = vmax.f32 %v1746_v38, 0.0  ;;  %v3949_v29 = vpack.c.bf16 %v2100_v34, %v2099_v22  ;;  %v2126_v38 = vld [vmem:[%s5641_s11 + $0x3e8] sm:$0xff] }
 0x511   : > { %v5364_v1 = vmax.f32 %v1741_v10, 0.0  ;;  %v3543_v19 = vpop.f32.mrb[40].mxu0  ;;  %v3967_v10 = vpack.c.bf16 %v2126_v38, %v2125_v60 }
 0x512   : > { %1780 = vst [vmem:[#allocation2 + $0x41] sm:$0xff] %v5362_v18  ;;  %v1756_v20 = vadd.f32 %v3543_v19, %v1651_v45  ;;  %v1750_v21 = vpop.f32.mrb[41].mxu0  ;;  %v3957_v45 = vpack.c.bf16 %v2104_v53, %v2103_v51  ;;  %v2109_v19 = vld [vmem:[%s5641_s11 + $0x360] sm:$0xff] }
 0x513   : > { %1779 = vst [vmem:[#allocation2 + $0x31] sm:$0xff] %v5364_v1  ;;  %v1751_v24 = vadd.f32 %v1750_v21, %v1646_v36  ;;  %v3953_v36 = vpack.c.bf16 %v2102_v0, %v2101_v44  ;;  %v2140_v44 = vld [vmem:[%s5641_s11 + $0x458] sm:$0xff] }
 0x514   : > { %v5380_v26 = vmax.f32 %v1756_v20, 0.0  ;;  %v2110_v20 = vld [vmem:[%s5641_s11 + $0x368] sm:$0xff] }
 0x515   : > { %v5382_v14 = vmax.f32 %v1751_v24, 0.0  ;;  %v3546_v27 = vpop.f32.mrb[42].mxu0  ;;  %v5401_v40 = vld [vmem:[#allocation2 + $0x20] sm:$0xff]  ;;  %v3969_v25 = vpack.c.bf16 %v2110_v20, %v2109_v19 }
 0x516   : > { %1782 = vst [vmem:[#allocation2 + $0x61] sm:$0xff] %v5380_v26  ;;  %v1766_v30 = vadd.f32 %v3546_v27, %v1661_v16  ;;  %v1760_v31 = vpop.f32.mrb[43].mxu0  ;;  %v1833_v32 = vld [vmem:[#allocation2 + $0x10] sm:$0xff]  ;;  %v5435_v54 = vld [vmem:[#allocation2 + $0x22] sm:$0xff]  ;;  %v3965_v16 = vpack.c.bf16 %v2108_v8, %v2107_v7 }
 0x517   : > { %1781 = vst [vmem:[#allocation2 + $0x51] sm:$0xff] %v5382_v14  ;;  %v1761_v35 = vadd.f32 %v1760_v31, %v1656_v6  ;;  %2321 = vmatprep.mubr.f32.mxu0 %v1833_v32  ;;  %2222 = vmatmul.mubr.f32.gmra.mrb[38].mxu1 %v1833_v32  ;;  %v5415_v46 = vld [vmem:[#allocation2 + $0x12] sm:$0xff]  ;;  %v3963_v6 = vpack.c.bf16 %v2124_v2, %v2123_v63 }
 0x518   : > { %v5398_v39 = vmax.f32 %v1766_v30, 0.0  ;;  %2322 = vmatmul.mubr.f32.vlgmr.msra.gmra.mrb[44].mxu0 %v1817_v28  ;;  %2226 = vmatprep.mubr.f32.mxu1 %v5355_v11  ;;  %v2111_v27 = vld [vmem:[%s5641_s11 + $0x370] sm:$0xff]  ;;  %v2112_v28 = vld [vmem:[%s5641_s11 + $0x378] sm:$0xff] }
 0x519   : > { %v5403_v42 = vmax.f32 %v1761_v35, 0.0  ;;  %2326 = vmatprep.mubr.f32.mxu0 %v5401_v40  ;;  %3946 = vmatpush3.bf16.msra.mxu0 %v3945_v41  ;;  %v5445_v57 = vld [vmem:[#allocation2 + $0x40] sm:$0xff]  ;;  %v2131_v30 = vld [vmem:[%s5641_s11 + $0x410] sm:$0xff]  ;;  %v2132_v31 = vld [vmem:[%s5641_s11 + $0x418] sm:$0xff] }
 0x51a   : > { %1784 = vst [vmem:[#allocation2 + $0x81] sm:$0xff] %v5398_v39  ;;  %3948 = vmatprep.subr.bf16.mxu0 %v3947_v33  ;;  %v5425_v49 = vld [vmem:[#allocation2 + $0x30] sm:$0xff]  ;;  %v5475_v12 = vld [vmem:[#allocation2 + $0x42] sm:$0xff]  ;;  %v3973_v33 = vpack.c.bf16 %v2112_v28, %v2111_v27  ;;  %v3979_v22 = vpack.c.bf16 %v2132_v31, %v2131_v30 }
 0x51b   : > { %1783 = vst [vmem:[#allocation2 + $0x71] sm:$0xff] %v5403_v42  ;;  %2227 = vmatmul.mubr.f32.gmra.mrb[40].mxu1 %v5401_v40  ;;  %v5455_v62 = vld [vmem:[#allocation2 + $0x32] sm:$0xff]  ;;  %v2133_v35 = vld [vmem:[%s5641_s11 + $0x420] sm:$0xff] }
 0x51c   : > { %2327 = vmatmul.mubr.f32.gmra.mrb[46].mxu0 %v5415_v46  ;;  %2231 = vmatprep.mubr.f32.mxu1 %v5364_v1  ;;  %v3983_v17 = vpack.c.bf16 %v2134_v37, %v2133_v35 }
 0x51d   : > { %2331 = vmatprep.mubr.f32.mxu0 %v5425_v49  ;;  %3950 = vmatpush3.bf16.msra.mxu0 %v3949_v29  ;;  %v5485_v15 = vld [vmem:[#allocation2 + $0x60] sm:$0xff]  ;;  %v2136_v29 = vld [vmem:[%s5641_s11 + $0x438] sm:$0xff] }
 0x51e   : > { %3952 = vmatprep.subr.bf16.mxu0 %v3951_v43  ;;  %v5465_v3 = vld [vmem:[#allocation2 + $0x50] sm:$0xff]  ;;  %v5515_v41 = vld [vmem:[#allocation2 + $0x62] sm:$0xff] }
 0x51f   : > { %2232 = vmatmul.mubr.f32.gmra.mrb[42].mxu1 %v5425_v49  ;;  %v5495_v21 = vld [vmem:[#allocation2 + $0x52] sm:$0xff]  ;;  %v2138_v43 = vld [vmem:[%s5641_s11 + $0x448] sm:$0xff] }
 0x520   : > { %2332 = vmatmul.mubr.f32.gmra.mrb[48].mxu0 %v5435_v54  ;;  %2236 = vmatprep.mubr.f32.mxu1 %v5362_v18 }
 0x521   : > { %2336 = vmatprep.mubr.f32.mxu0 %v5445_v57  ;;  %3954 = vmatpush3.bf16.msra.mxu0 %v3953_v36  ;;  %v5524_v32 = vld [vmem:[#allocation2 + $0x80] sm:$0xff]  ;;  %v1904_v36 = vld [vmem:[#allocation2 + $0x91] sm:$0xff] }
 0x522   : > { %3956 = vmatprep.subr.bf16.mxu0 %v3955_v50  ;;  %v5505_v24 = vld [vmem:[#allocation2 + $0x70] sm:$0xff] }
 0x523   : > { %2237 = vmatmul.mubr.f32.gmra.mrb[44].mxu1 %v5445_v57  ;;  %v5528_v34 = vld [vmem:[#allocation2 + $0x72] sm:$0xff] }
 0x524   : > { %2337 = vmatmul.mubr.f32.gmra.mrb[50].mxu0 %v5455_v62  ;;  %2241 = vmatprep.mubr.f32.mxu1 %v5382_v14 }
 0x525   : > { %2341 = vmatprep.mubr.f32.mxu0 %v5465_v3  ;;  %3958 = vmatpush3.bf16.msra.mxu0 %v3957_v45 }
 0x526   : > { %3960 = vmatprep.subr.bf16.mxu0 %v3959_v58 }
 0x527   : > { %2242 = vmatmul.mubr.f32.gmra.mrb[46].mxu1 %v5465_v3 }
 0x528   : > { %2342 = vmatmul.mubr.f32.gmra.mrb[52].mxu0 %v5475_v12  ;;  %2246 = vmatprep.mubr.f32.mxu1 %v5380_v26 }
 0x529   : > { %2346 = vmatprep.mubr.f32.mxu0 %v5485_v15  ;;  %3962 = vmatpush3.bf16.msra.mxu0 %v3961_v52 }
 0x52a   : > { %3964 = vmatprep.subr.bf16.mxu0 %v3963_v6 }
 0x52b   : > { %2247 = vmatmul.mubr.f32.gmra.mrb[48].mxu1 %v5485_v15  ;;  %v3147_v50 = vpop.f32.mrb[36].mxu1 }
 0x52c   : > { %2347 = vmatmul.mubr.f32.gmra.mrb[54].mxu0 %v5495_v21  ;;  %2251 = vmatprep.mubr.f32.mxu1 %v5403_v42  ;;  %v3148_v51 = vpop.f32.mrb[37].mxu1 }
 0x52d   : > { %2351 = vmatprep.mubr.f32.mxu0 %v5505_v24  ;;  %3966 = vmatpush3.bf16.msra.mxu0 %v3965_v16  ;;  %v3149_v53 = vadd.f32 %v3148_v51, %v3147_v50 }
 0x52e   : > { %3968 = vmatprep.subr.bf16.mxu0 %v3967_v10 }
 0x52f   : > { %2252 = vmatmul.mubr.f32.gmra.mrb[50].mxu1 %v5505_v24 }
 0x530   : > { %2352 = vmatmul.mubr.f32.gmra.mrb[56].mxu0 %v5515_v41  ;;  %2426 = vmatprep.mubr.f32.mxu1 %v5415_v46  ;;  %v2142_v46 = vld [vmem:[%s5641_s11 + $0x468] sm:$0xff] }
 0x531   : > { %2356 = vmatprep.mubr.f32.mxu0 %v5524_v32  ;;  %3970 = vmatpush3.bf16.msra.mxu0 %v3969_v25 }
 0x532   : > { %3972 = vmatprep.subr.bf16.mxu0 %v3971_v5 }
 0x533   : > { %2427 = vmatmul.mubr.f32.vlgmr.msra.gmra.mrb[52].mxu1 %v5357_v13  ;;  %v2135_v13 = vld [vmem:[%s5641_s11 + $0x430] sm:$0xff] }
 0x534   : > { %2357 = vmatmul.mubr.f32.gmra.mrb[58].mxu0 %v5528_v34  ;;  %3978 = vmatpush3.bf16.msra.mxu1 %v5348_v4  ;;  %v3987_v4 = vpack.c.bf16 %v2136_v29, %v2135_v13 }
 0x535   : > { %2431 = vmatprep.mubr.f32.mxu1 %v5435_v54  ;;  %3974 = vmatpush3.bf16.msra.mxu0 %v3973_v33 }
 0x536   : > { %2531 = vmatprep.mubr.f32.mxu0 %v5355_v11  ;;  %3980 = vmatprep.subr.bf16.mxu1 %v3979_v22 }
 0x537   : > { %2432 = vmatmul.mubr.f32.gmra.mrb[54].mxu1 %v5355_v11  ;;  %v2137_v11 = vld [vmem:[%s5641_s11 + $0x440] sm:$0xff] }
 0x538   : > { %2532 = vmatmul.mubr.f32.vlgmr.msra.gmra.mrb[60].mxu0 %v5401_v40  ;;  %3982 = vmatpush3.bf16.msra.mxu1 %v3979_v22  ;;  %v3991_v40 = vpack.c.bf16 %v2138_v43, %v2137_v11 }
 0x539   : > { %2436 = vmatprep.mubr.f32.mxu1 %v5455_v62  ;;  %2536 = vmatprep.mubr.f32.mxu0 %v5364_v1 }
 0x53a   : > { %3984 = vmatprep.subr.bf16.mxu1 %v3983_v17 }
 0x53b   : > { %2437 = vmatmul.mubr.f32.gmra.mrb[56].mxu1 %v5364_v1  ;;  %v2139_v1 = vld [vmem:[%s5641_s11 + $0x450] sm:$0xff] }
 0x53c   : > { %2537 = vmatmul.mubr.f32.gmra.mrb[62].mxu0 %v5425_v49  ;;  %3986 = vmatpush3.bf16.msra.mxu1 %v3983_v17  ;;  %v3995_v0 = vpack.c.bf16 %v2140_v44, %v2139_v1 }
 0x53d   : > { %2441 = vmatprep.mubr.f32.mxu1 %v5475_v12  ;;  %2541 = vmatprep.mubr.f32.mxu0 %v5362_v18 }
 0x53e   : > { %3988 = vmatprep.subr.bf16.mxu1 %v3987_v4 }
 0x53f   : > { %2442 = vmatmul.mubr.f32.gmra.mrb[58].mxu1 %v5362_v18  ;;  %v2141_v18 = vld [vmem:[%s5641_s11 + $0x460] sm:$0xff] }
 0x540   : > { %2542 = vmatmul.mubr.f32.gmra.mrb[64].mxu0 %v5445_v57  ;;  %3990 = vmatpush3.bf16.msra.mxu1 %v3987_v4  ;;  %v3999_v47 = vpack.c.bf16 %v2142_v46, %v2141_v18 }
 0x541   : > { %2446 = vmatprep.mubr.f32.mxu1 %v5495_v21  ;;  %2546 = vmatprep.mubr.f32.mxu0 %v5382_v14 }
 0x542   : > { %3992 = vmatprep.subr.bf16.mxu1 %v3991_v40 }
 0x543   : > { %2447 = vmatmul.mubr.f32.gmra.mrb[60].mxu1 %v5382_v14  ;;  %v2143_v14 = vld [vmem:[%s5641_s11 + $0x470] sm:$0xff] }
 0x544   : > { %2547 = vmatmul.mubr.f32.gmra.mrb[66].mxu0 %v5465_v3  ;;  %3994 = vmatpush3.bf16.msra.mxu1 %v3991_v40  ;;  %v4003_v49 = vpack.c.bf16 %v2144_v48, %v2143_v14 }
 0x545   : > { %2451 = vmatprep.mubr.f32.mxu1 %v5515_v41  ;;  %2551 = vmatprep.mubr.f32.mxu0 %v5380_v26 }
 0x546   : > { %3996 = vmatprep.subr.bf16.mxu1 %v3995_v0 }
 0x547   : > { %2452 = vmatmul.mubr.f32.gmra.mrb[62].mxu1 %v5380_v26  ;;  %v1872_v26 = vld [vmem:[#allocation2 + $0x82] sm:$0xff] }
 0x548   : > { %2552 = vmatmul.mubr.f32.gmra.mrb[68].mxu0 %v5485_v15  ;;  %3998 = vmatpush3.bf16.msra.mxu1 %v3995_v0 }
 0x549   : > { %2456 = vmatprep.mubr.f32.mxu1 %v5528_v34  ;;  %2556 = vmatprep.mubr.f32.mxu0 %v5403_v42 }
 0x54a   : > { %4000 = vmatprep.subr.bf16.mxu1 %v3999_v47 }
 0x54b   : > { %2457 = vmatmul.mubr.f32.gmra.mrb[64].mxu1 %v5403_v42  ;;  %v4062_v42 = vld [vmem:[#allocation2] sm:$0xff] }
 0x54c   : > { %2557 = vmatmul.mubr.f32.gmra.mrb[70].mxu0 %v5505_v24  ;;  %4002 = vmatpush3.bf16.msra.mxu1 %v3999_v47 }
 0x54d   : > { %2461 = vmatprep.mubr.f32.mxu1 %v1872_v26  ;;  %2561 = vmatprep.mubr.f32.mxu0 %v5398_v39 }
 0x54e   : > { %4004 = vmatprep.subr.bf16.mxu1 %v4003_v49 }
 0x54f   : > { %2462 = vmatmul.mubr.f32.gmra.mrb[66].mxu1 %v5398_v39  ;;  %v1920_v39 = vld [vmem:[#allocation2 + $0x92] sm:$0xff] }
 0x550   : > { %2562 = vmatmul.mubr.f32.gmra.mrb[72].mxu0 %v5524_v32  ;;  %4006 = vmatpush3.bf16.msra.mxu1 %v4003_v49 }
 0x551   : > { %3579 = vmatprep.mubr.f32.mxu1 %v5435_v54  ;;  %2566 = vmatprep.mubr.f32.mxu0 %v1904_v36  ;;  %v2795_v54 = vld [vmem:[%s5660_s18] ss:$0 sm:$0xff] }
 0x552   : > { %v2219_v59 = vadd.f32 %v3149_v53, %v2795_v54 }
 0x553   : > { %3580 = vmatmul.mubr.f32.vlgmr.msra.gmra.mrb[68].mxu1 %v5455_v62 }
 0x554   : > { %2567 = vmatmul.mubr.f32.gmra.mrb[74].mxu0 %v4062_v42  ;;  %3582 = vmatprep.mubr.f32.mxu1 %v5475_v12 }
 0x557   : > { %3583 = vmatmul.mubr.f32.gmra.mrb[70].mxu1 %v5495_v21 }
 0x558   : > { %3585 = vmatprep.mubr.f32.mxu1 %v5515_v41 }
 0x55b   : > { %3586 = vmatmul.mubr.f32.gmra.mrb[72].mxu1 %v5528_v34 }
 0x55c   : > { %3588 = vmatprep.mubr.f32.mxu1 %v1872_v26 }
 0x55f   : > { %3589 = vmatmul.mubr.f32.gmra.mrb[74].mxu1 %v1920_v39 }
 0x5ea   : > { %v3150_v55 = vpop.f32.mrb[38].mxu1 }
 0x5eb   : > { %v3203_v56 = vpop.f32.mrb[44].mxu0  ;;  %v3151_v57 = vpop.f32.mrb[39].mxu1 }
 0x5ec   : > { %v3152_v45 = vadd.f32 %v3151_v57, %v3150_v55  ;;  %v3204_v58 = vpop.f32.mrb[45].mxu0 }
 0x5ed   : > { %v3205_v61 = vadd.f32 %v3204_v58, %v3203_v56 }
 0x5ee   : > { %v3153_v62 = vpop.f32.mrb[40].mxu1  ;;  %v2224_v7 = vadd.f32 %v3152_v45, %v2795_v54 }
 0x5ef   : > { %v2324_v63 = vadd.f32 %v3205_v61, %v2219_v59  ;;  %v3206_v2 = vpop.f32.mrb[46].mxu0  ;;  %v3154_v3 = vpop.f32.mrb[41].mxu1 }
 0x5f0   : > { %v3155_v52 = vadd.f32 %v3154_v3, %v3153_v62  ;;  %v3207_v6 = vpop.f32.mrb[47].mxu0 }
 0x5f1   : > { %v3208_v8 = vadd.f32 %v3207_v6, %v3206_v2 }
 0x5f2   : > { %v3156_v12 = vpop.f32.mrb[42].mxu1  ;;  %v2229_v19 = vadd.f32 %v3155_v52, %v2795_v54 }
 0x5f3   : > { %v2329_v60 = vadd.f32 %v3208_v8, %v2224_v7  ;;  %v3209_v38 = vpop.f32.mrb[48].mxu0  ;;  %v3157_v15 = vpop.f32.mrb[43].mxu1 }
 0x5f4   : > { %v3158_v16 = vadd.f32 %v3157_v15, %v3156_v12  ;;  %v3210_v10 = vpop.f32.mrb[49].mxu0 }
 0x5f5   : > { %v3211_v20 = vadd.f32 %v3210_v10, %v3209_v38 }
 0x5f6   : > { %v3159_v21 = vpop.f32.mrb[44].mxu1  ;;  %v2234_v27 = vadd.f32 %v3158_v16, %v2795_v54 }
 0x5f7   : > { %v2334_v23 = vadd.f32 %v3211_v20, %v2229_v19  ;;  %v3212_v9 = vpop.f32.mrb[50].mxu0  ;;  %v3160_v24 = vpop.f32.mrb[45].mxu1 }
 0x5f8   : > { %v3161_v25 = vadd.f32 %v3160_v24, %v3159_v21  ;;  %v3213_v5 = vpop.f32.mrb[51].mxu0 }
 0x5f9   : > { %v3214_v28 = vadd.f32 %v3213_v5, %v3212_v9 }
 0x5fa   : > { %v3162_v41 = vpop.f32.mrb[46].mxu1  ;;  %v2239_v34 = vadd.f32 %v3161_v25, %v2795_v54 }
 0x5fb   : > { %v2339_v30 = vadd.f32 %v3214_v28, %v2234_v27  ;;  %v3215_v31 = vpop.f32.mrb[52].mxu0  ;;  %v3163_v32 = vpop.f32.mrb[47].mxu1 }
 0x5fc   : > { %v3164_v33 = vadd.f32 %v3163_v32, %v3162_v41  ;;  %v3216_v22 = vpop.f32.mrb[53].mxu0 }
 0x5fd   : > { %v3217_v35 = vadd.f32 %v3216_v22, %v3215_v31 }
 0x5fe   : > { %v3165_v37 = vpop.f32.mrb[48].mxu1  ;;  %v2244_v43 = vadd.f32 %v3164_v33, %v2795_v54 }
 0x5ff   : > { %v2344_v17 = vadd.f32 %v3217_v35, %v2239_v34  ;;  %v3218_v13 = vpop.f32.mrb[54].mxu0  ;;  %v3166_v29 = vpop.f32.mrb[49].mxu1 }
 0x600   : > { %v3167_v4 = vadd.f32 %v3166_v29, %v3165_v37  ;;  %v3219_v11 = vpop.f32.mrb[55].mxu0 }
 0x601   : > { %v3220_v40 = vadd.f32 %v3219_v11, %v3218_v13 }
 0x602   : > { %v3168_v1 = vpop.f32.mrb[50].mxu1  ;;  %v2249_v14 = vadd.f32 %v3167_v4, %v2795_v54 }
 0x603   : > { %v2349_v44 = vadd.f32 %v3220_v40, %v2244_v43  ;;  %v3221_v0 = vpop.f32.mrb[56].mxu0  ;;  %v3169_v18 = vpop.f32.mrb[51].mxu1 }
 0x604   : > { %v3170_v46 = vadd.f32 %v3169_v18, %v3168_v1  ;;  %v3222_v47 = vpop.f32.mrb[57].mxu0 }
 0x605   : > { %v3223_v48 = vadd.f32 %v3222_v47, %v3221_v0 }
 0x606   : > { %v3259_v49 = vpop.f32.mrb[52].mxu1  ;;  %v2254_v51 = vadd.f32 %v3170_v46, %v2795_v54 }
 0x607   : > { %v2354_v26 = vadd.f32 %v3223_v48, %v2249_v14  ;;  %v3224_v36 = vpop.f32.mrb[58].mxu0  ;;  %v3260_v42 = vpop.f32.mrb[53].mxu1 }
 0x608   : > { %v3225_v39 = vpop.f32.mrb[59].mxu0  ;;  %v3261_v50 = vadd.f32 %v3260_v42, %v3259_v49 }
 0x609   : > { %v3226_v53 = vadd.f32 %v3225_v39, %v3224_v36 }
 0x60a   : > { %v2429_v55 = vadd.f32 %v3261_v50, %v2324_v63  ;;  %v3262_v56 = vpop.f32.mrb[54].mxu1 }
 0x60b   : > { %v2359_v57 = vadd.f32 %v3226_v53, %v2254_v51  ;;  %v3315_v45 = vpop.f32.mrb[60].mxu0  ;;  %v3263_v58 = vpop.f32.mrb[55].mxu1 }
 0x60c   : > { %v3264_v59 = vadd.f32 %v3263_v58, %v3262_v56  ;;  %v3316_v61 = vpop.f32.mrb[61].mxu0 }
 0x60d   : > { %v3317_v62 = vadd.f32 %v3316_v61, %v3315_v45 }
 0x60e   : > { %v2434_v2 = vadd.f32 %v3264_v59, %v2329_v60  ;;  %v3265_v3 = vpop.f32.mrb[56].mxu1 }
 0x60f   : > { %v3318_v52 = vpop.f32.mrb[62].mxu0  ;;  %v3266_v6 = vpop.f32.mrb[57].mxu1  ;;  %v2534_v7 = vadd.f32 %v3317_v62, %v2429_v55 }
 0x610   : > { %v3267_v8 = vadd.f32 %v3266_v6, %v3265_v3  ;;  %v3319_v12 = vpop.f32.mrb[63].mxu0 }
 0x611   : > { %v3320_v38 = vadd.f32 %v3319_v12, %v3318_v52 }
 0x612   : > { %v2439_v15 = vadd.f32 %v3267_v8, %v2334_v23  ;;  %v3268_v16 = vpop.f32.mrb[58].mxu1 }
 0x613   : > { %v3321_v54 = vpop.f32.mrb[64].mxu0  ;;  %v3269_v10 = vpop.f32.mrb[59].mxu1  ;;  %v2539_v63 = vadd.f32 %v3320_v38, %v2434_v2 }
 0x614   : > { %v3270_v19 = vadd.f32 %v3269_v10, %v3268_v16  ;;  %v3322_v20 = vpop.f32.mrb[65].mxu0 }
 0x615   : > { %v3323_v21 = vadd.f32 %v3322_v20, %v3321_v54 }
 0x616   : > { %v2444_v9 = vadd.f32 %v3270_v19, %v2339_v30  ;;  %v3271_v24 = vpop.f32.mrb[60].mxu1 }
 0x617   : > { %v3324_v25 = vpop.f32.mrb[66].mxu0  ;;  %v3272_v5 = vpop.f32.mrb[61].mxu1  ;;  %v2544_v60 = vadd.f32 %v3323_v21, %v2439_v15 }
 0x618   : > { %v3273_v27 = vadd.f32 %v3272_v5, %v3271_v24  ;;  %v3325_v28 = vpop.f32.mrb[67].mxu0 }
 0x619   : > { %v3326_v41 = vadd.f32 %v3325_v28, %v3324_v25 }
 0x61a   : > { %v2449_v31 = vadd.f32 %v3273_v27, %v2344_v17  ;;  %v3274_v32 = vpop.f32.mrb[62].mxu1 }
 0x61b   : > { %v3327_v33 = vpop.f32.mrb[68].mxu0  ;;  %v3275_v23 = vpop.f32.mrb[63].mxu1  ;;  %v2549_v22 = vadd.f32 %v3326_v41, %v2444_v9 }
 0x61c   : > { %v3276_v34 = vadd.f32 %v3275_v23, %v3274_v32  ;;  %v3328_v35 = vpop.f32.mrb[69].mxu0 }
 0x61d   : > { %v3329_v37 = vadd.f32 %v3328_v35, %v3327_v33 }
 0x61e   : > { %v2454_v13 = vadd.f32 %v3276_v34, %v2349_v44  ;;  %v3277_v29 = vpop.f32.mrb[64].mxu1 }
 0x61f   : > { %v3330_v4 = vpop.f32.mrb[70].mxu0  ;;  %v3278_v30 = vpop.f32.mrb[65].mxu1  ;;  %v2554_v11 = vadd.f32 %v3329_v37, %v2449_v31 }
 0x620   : > { %v3279_v43 = vadd.f32 %v3278_v30, %v3277_v29  ;;  %v3331_v40 = vpop.f32.mrb[71].mxu0 }
 0x621   : > { %v3332_v1 = vadd.f32 %v3331_v40, %v3330_v4 }
 0x622   : > { %v2459_v0 = vadd.f32 %v3279_v43, %v2354_v26  ;;  %v3280_v18 = vpop.f32.mrb[66].mxu1 }
 0x623   : > { %v3333_v17 = vpop.f32.mrb[72].mxu0  ;;  %v3281_v46 = vpop.f32.mrb[67].mxu1  ;;  %v2559_v47 = vadd.f32 %v3332_v1, %v2454_v13 }
 0x624   : > { %v3282_v14 = vadd.f32 %v3281_v46, %v3280_v18  ;;  %v3334_v48 = vpop.f32.mrb[73].mxu0 }
 0x625   : > { %v3335_v49 = vadd.f32 %v3334_v48, %v3333_v17 }
 0x626   : > { %v2464_v44 = vadd.f32 %v3282_v14, %v2359_v57  ;;  %v3581_v36 = vpop.f32.mrb[68].mxu1 }
 0x627   : > { %v3336_v26 = vpop.f32.mrb[74].mxu0  ;;  %v2644_v42 = vadd.f32 %v3581_v36, %v2539_v63  ;;  %v2638_v39 = vpop.f32.mrb[69].mxu1  ;;  %v2564_v50 = vadd.f32 %v3335_v49, %v2459_v0 }
 0x628   : > { %v3337_v51 = vpop.f32.mrb[75].mxu0  ;;  %v2639_v53 = vadd.f32 %v2638_v39, %v2534_v7 }
 0x629   : > { %2679 = vst.msk [vmem:[%s5609_s19 + $0x8] sm:$0xff] %vm2677_vm1, %v2644_v42  ;;  %v3338_v55 = vadd.f32 %v3337_v51, %v3336_v26 }
 0x62a   : > { %2678 = vst.msk [vmem:[%s5609_s19] sm:$0xff] %vm2677_vm1, %v2639_v53  ;;  %v3584_v56 = vpop.f32.mrb[70].mxu1 }
 0x62b   : > { %v2654_v45 = vadd.f32 %v3584_v56, %v2549_v22  ;;  %v2648_v57 = vpop.f32.mrb[71].mxu1  ;;  %v2569_v58 = vadd.f32 %v3338_v55, %v2464_v44 }
 0x62c   : > { %v2649_v59 = vadd.f32 %v2648_v57, %v2544_v60 }
 0x62d   : > { %2681 = vst.msk [vmem:[%s5609_s19 + $0x18] sm:$0xff] %vm2677_vm1, %v2654_v45 }
 0x62e   : > { %2680 = vst.msk [vmem:[%s5609_s19 + $0x10] sm:$0xff] %vm2677_vm1, %v2649_v59  ;;  %v3587_v61 = vpop.f32.mrb[72].mxu1 }
 0x62f   : > { %v2664_v62 = vadd.f32 %v3587_v61, %v2559_v47  ;;  %v2658_v2 = vpop.f32.mrb[73].mxu1 }
 0x630   : > { %v2659_v3 = vadd.f32 %v2658_v2, %v2554_v11 }
 0x631   : > { %2683 = vst.msk [vmem:[%s5609_s19 + $0x28] sm:$0xff] %vm2677_vm1, %v2664_v62 }
 0x632   : > { %2682 = vst.msk [vmem:[%s5609_s19 + $0x20] sm:$0xff] %vm2677_vm1, %v2659_v3  ;;  %v3590_v52 = vpop.f32.mrb[74].mxu1 }
 0x633   : > { %v2674_v6 = vadd.f32 %v3590_v52, %v2569_v58  ;;  %v2668_v7 = vpop.f32.mrb[75].mxu1 }
 0x634   : > { %v2669_v8 = vadd.f32 %v2668_v7, %v2564_v50 }
 0x635   : > { %2685 = vst.msk [vmem:[%s5609_s19 + $0x38] sm:$0xff] %vm2677_vm1, %v2674_v6 }
 0x636   : > { %2684 = vst.msk [vmem:[%s5609_s19 + $0x30] sm:$0xff] %vm2677_vm1, %v2669_v8 }
 0x637 PF: > { %s5662_s26 = sld [smem:[#allocation14_spill]] }
 0x63d   : > { %s26_s25 = sadd.s32 1, %s5662_s26  }
 0x63e   : > { %p23_p6 = scmp.ge.s32.totalorder %s26_s25, 4  }
 0x640   :  { %25 = sbr.rel (!%p23_p6) target bundleno = 6 (0x6), region = 121 }
 0x647   :  { %2707 = vsyncpa [#allocation5], 1 }
 0x648   :  { %2709 = vsyncpa [#allocation5 + $0x1], 1 }
 0x649   :  { %2710 = vsyncpa [#allocation7], 1 }
 0x64a   :  { %2711 = vsyncpa [#allocation10], 1 }

</bundles_post_ra>
